<compile_context>
chip_gen: v7x
topology: tpu7x:2x2x1
jax: 0.10.0
libtpu: 0.0.40
codegen_flags: <defaults>
</compile_context>

<pallas_src>
import jax
import jax.numpy as jnp
from jax import lax
from jax.experimental import pallas as pl
from jax.experimental.pallas import tpu as pltpu

# ------------------------- model hyper-parameters -------------------------
OBS_LEN = 8
PRED_LEN = 8
ENC_H = 32          # encoder_h_dim
DEC_H = 32          # decoder_h_dim
MLP_DIM = 64
NOISE_DIM = 8
IN_DIM = 3          # (x, y, z) relative displacement
BN_EPS = 1e-5

VMEM_SPEC = pl.BlockSpec(memory_space=pltpu.MemorySpace.VMEM)


# ------------------------------ kernel helpers -----------------------------
def _lstm_cell(gates, c, g_scale, H):
    """PyTorch LSTM cell update from pre-activation gates (order i, f, g, o).

    One full-width EUP pass: sigmoid(gates * g_scale) with g_scale = 2 on the
    'g' quarter gives tanh(g) via 2*sigmoid(2g)-1; i/f/o lanes use scale 1.
    Only the cell-state tanh (H lanes) remains as a second, narrow EUP op.
    """
    sg = jax.nn.sigmoid(gates * g_scale)
    i = sg[:, 0 * H:1 * H]
    f = sg[:, 1 * H:2 * H]
    g = 2.0 * sg[:, 2 * H:3 * H] - 1.0        # tanh via single sigmoid pass
    o = sg[:, 3 * H:4 * H]
    c_new = f * c + i * g
    h_new = o * jnp.tanh(c_new)
    return h_new, c_new


# ------------------------------ fused kernel -------------------------------
def generator_kernel(xf_ref, noise_ref,
                     enc_wih_ref, enc_whh_ref, enc_b_ref,
                     w1_ref, b1_ref, g1_ref, be1_ref,
                     w2_ref, b2_ref, g2_ref, be2_ref,
                     dec_wih_ref, dec_b_ref,
                     dec_whh_z_ref, dec_whh_n_ref,
                     wfused_ref, bfused_ref,
                     wout_ref, bout_ref,
                     out_ref):
    T, P = OBS_LEN, PRED_LEN
    B = noise_ref.shape[0]

    # Lane-scale for the one-pass gate nonlinearity (ENC_H == DEC_H == 32).
    lane = lax.broadcasted_iota(jnp.int32, (1, 4 * ENC_H), 1)
    g_scale = jnp.where((lane >= 2 * ENC_H) & (lane < 3 * ENC_H),
                        jnp.float32(2.0), jnp.float32(1.0))

    # ------------------------------ encoder LSTM ---------------------------
    xf = xf_ref[...]                         # (T*B, 3)
    enc_whh = enc_whh_ref[...]               # (H, 4H)
    # ONE batched input projection for all T steps (off the recurrent chain).
    x_proj_all = (jnp.dot(xf, enc_wih_ref[...],
                          preferred_element_type=jnp.float32) + enc_b_ref[...])
    x_proj = [x_proj_all[t * B:(t + 1) * B, :] for t in range(T)]

    h = jnp.zeros((B, ENC_H), jnp.float32)
    c = jnp.zeros((B, ENC_H), jnp.float32)
    for t in range(T):                       # static unroll; serial recurrence
        gates = jnp.dot(h, enc_whh, preferred_element_type=jnp.float32) + x_proj[t]
        h, c = _lstm_cell(gates, c, g_scale, ENC_H)

    # -------- encoder_compression: Linear -> BN(train) -> ReLU (x2) --------
    y = jnp.dot(h, w1_ref[...], preferred_element_type=jnp.float32) + b1_ref[...]
    mu = jnp.mean(y, axis=0, keepdims=True)
    var = jnp.mean((y - mu) * (y - mu), axis=0, keepdims=True)   # biased var
    y = (y - mu) * lax.rsqrt(var + BN_EPS) * g1_ref[...] + be1_ref[...]
    y = jnp.maximum(y, 0.0)

    z = jnp.dot(y, w2_ref[...], preferred_element_type=jnp.float32) + b2_ref[...]
    mu2 = jnp.mean(z, axis=0, keepdims=True)
    var2 = jnp.mean((z - mu2) * (z - mu2), axis=0, keepdims=True)
    z = (z - mu2) * lax.rsqrt(var2 + BN_EPS) * g2_ref[...] + be2_ref[...]
    z = jnp.maximum(z, 0.0)                  # (B, DEC_H - NOISE_DIM)

    # ---------------- decoder LSTM with folded hidden2pos ------------------
    wfused = wfused_ref[...]                 # (H, 4H) = W_hh + W_out @ W_ih
    bfused = bfused_ref[...]                 # (1, 4H) = b + b_out @ W_ih
    wout = wout_ref[...]                     # (H, 3)
    bout = bout_ref[...]                     # (1, 3)

    # add_noise: h0 = concat([z, noise], 1) done as a split h0 @ W_hh matmul
    # against the host-pre-split halves of W_hh (mathematically identical,
    # no in-kernel lane concat or unaligned sublane slice).
    x0 = xf[(T - 1) * B:T * B, :]            # last observed rel. displacement
    gates0 = (jnp.dot(x0, dec_wih_ref[...], preferred_element_type=jnp.float32)
              + jnp.dot(z, dec_whh_z_ref[...], preferred_element_type=jnp.float32)
              + jnp.dot(noise_ref[...], dec_whh_n_ref[...],
                        preferred_element_type=jnp.float32)
              + dec_b_ref[...])
    c_dec = jnp.zeros((B, DEC_H), jnp.float32)
    h_dec, c_dec = _lstm_cell(gates0, c_dec, g_scale, DEC_H)
    hs = [h_dec]                             # keep hiddens live; no VMEM stores
    for t in range(1, P):                    # static unroll; serial recurrence
        gates = jnp.dot(h_dec, wfused, preferred_element_type=jnp.float32) + bfused
        h_dec, c_dec = _lstm_cell(gates, c_dec, g_scale, DEC_H)
        hs.append(h_dec)

    # hidden2pos readout runs entirely AFTER the recurrence (no MXU push/pops
    # queued on the serial chain); each out_ref[t] store starts a fresh
    # (8,128) tile, so stores are unmasked and aligned.
    for t in range(P):
        out_ref[t] = (jnp.dot(hs[t], wout, preferred_element_type=jnp.float32)
                      + bout)


# ------------------------------ host wrappers ------------------------------
def init_params(key):
    """Deterministic synthetic parameters matching the PyTorch module shapes."""
    ks = jax.random.split(key, 14)

    def u(k, shape, fan_in):
        bound = 1.0 / jnp.sqrt(jnp.float32(fan_in))
        return jax.random.uniform(k, shape, jnp.float32, -bound, bound)

    p = {}
    # Encoder LSTM: weight_ih (4H,3), weight_hh (4H,H), biases (4H,)
    p["enc_w_ih_t"] = u(ks[0], (IN_DIM, 4 * ENC_H), ENC_H)
    p["enc_w_hh_t"] = u(ks[1], (ENC_H, 4 * ENC_H), ENC_H)
    p["enc_b"] = (u(ks[2], (1, 4 * ENC_H), ENC_H)
                  + u(ks[3], (1, 4 * ENC_H), ENC_H))          # b_ih + b_hh
    # encoder_compression MLP: [ENC_H -> MLP_DIM -> DEC_H - NOISE_DIM]
    p["mlp_w1_t"] = u(ks[4], (ENC_H, MLP_DIM), ENC_H)
    p["mlp_b1"] = u(ks[5], (1, MLP_DIM), ENC_H)
    p["bn1_g"] = jnp.ones((1, MLP_DIM), jnp.float32)
    p["bn1_b"] = jnp.zeros((1, MLP_DIM), jnp.float32)
    p["mlp_w2_t"] = u(ks[6], (MLP_DIM, DEC_H - NOISE_DIM), MLP_DIM)
    p["mlp_b2"] = u(ks[7], (1, DEC_H - NOISE_DIM), MLP_DIM)
    p["bn2_g"] = jnp.ones((1, DEC_H - NOISE_DIM), jnp.float32)
    p["bn2_b"] = jnp.zeros((1, DEC_H - NOISE_DIM), jnp.float32)
    # Decoder LSTM + hidden2pos
    p["dec_w_ih_t"] = u(ks[8], (IN_DIM, 4 * DEC_H), DEC_H)
    p["dec_w_hh_t"] = u(ks[9], (DEC_H, 4 * DEC_H), DEC_H)
    p["dec_b"] = (u(ks[10], (1, 4 * DEC_H), DEC_H)
                  + u(ks[11], (1, 4 * DEC_H), DEC_H))
    p["out_w_t"] = u(ks[12], (DEC_H, IN_DIM), DEC_H)
    p["out_b"] = u(ks[13], (1, IN_DIM), DEC_H)
    return p


def generator_forward(obs_traj_rel, params, noise):
    """obs_traj_rel: (obs_len, batch, 3); noise: (batch, NOISE_DIM) gaussian."""
    T, B, _ = obs_traj_rel.shape
    Z = DEC_H - NOISE_DIM

    # Flatten time into the sublane axis so the encoder input projection is a
    # single (T*B,3)@(3,4H) matmul inside the kernel.
    x_flat = obs_traj_rel.reshape(T * B, IN_DIM)

    # Call-invariant parameter transforms done OUTSIDE the kernel:
    #   x_{t>=1} = h_{t-1} @ W_out + b_out folded into the decoder gate matmul,
    #   and W_hh pre-split at the z/noise boundary.
    w_fused = params["dec_w_hh_t"] + jnp.dot(params["out_w_t"], params["dec_w_ih_t"])
    b_fused = params["dec_b"] + jnp.dot(params["out_b"], params["dec_w_ih_t"])
    dec_whh_z = params["dec_w_hh_t"][:Z, :]
    dec_whh_n = params["dec_w_hh_t"][Z:, :]

    args = (x_flat, noise,
            params["enc_w_ih_t"], params["enc_w_hh_t"], params["enc_b"],
            params["mlp_w1_t"], params["mlp_b1"], params["bn1_g"], params["bn1_b"],
            params["mlp_w2_t"], params["mlp_b2"], params["bn2_g"], params["bn2_b"],
            params["dec_w_ih_t"], params["dec_b"],
            dec_whh_z, dec_whh_n, w_fused, b_fused,
            params["out_w_t"], params["out_b"])

    # Advisory cost estimate (helps XLA schedule surrounding glue ops).
    flops = int(
        2 * T * B * IN_DIM * 4 * ENC_H                       # batched input proj
        + T * 2 * B * ENC_H * 4 * ENC_H                      # encoder recurrence
        + 2 * B * ENC_H * MLP_DIM + 2 * B * MLP_DIM * Z      # MLP
        + 2 * B * IN_DIM * 4 * DEC_H                         # decoder step 0
        + 2 * B * Z * 4 * DEC_H + 2 * B * NOISE_DIM * 4 * DEC_H
        + (PRED_LEN - 1) * 2 * B * DEC_H * 4 * DEC_H         # decoder recurrence
        + PRED_LEN * 2 * B * DEC_H * IN_DIM)                 # readout
    transcendentals = int((T + PRED_LEN) * B * (4 * DEC_H + DEC_H))
    bytes_accessed = int(4 * (sum(int(a.size) for a in args)
                              + PRED_LEN * B * IN_DIM))

    pred_traj_rel = pl.pallas_call(
        generator_kernel,
        out_shape=jax.ShapeDtypeStruct((PRED_LEN, B, IN_DIM), jnp.float32),
        in_specs=[VMEM_SPEC] * len(args),
        out_specs=VMEM_SPEC,
        cost_estimate=pl.CostEstimate(flops=flops,
                                      transcendentals=transcendentals,
                                      bytes_accessed=bytes_accessed),
    )(*args)
    return pred_traj_rel


if __name__ == "__main__":
    key = jax.random.PRNGKey(0)
    k_param, k_in, k_noise = jax.random.split(key, 3)

    batch = 4
    params = init_params(k_param)
    obs_traj_rel = jax.random.normal(k_in, (OBS_LEN, batch, IN_DIM), jnp.float32)
    # get_noise('gaussian') equivalent, passed deterministically as user_noise
    noise = jax.random.normal(k_noise, (batch, NOISE_DIM), jnp.float32)

    pred_traj_rel = jax.jit(generator_forward)(obs_traj_rel, params, noise)
    pred_traj_rel = jax.block_until_ready(pred_traj_rel)

    assert pred_traj_rel.shape == (PRED_LEN, batch, IN_DIM)
    assert jnp.all(jnp.isfinite(pred_traj_rel))
    print("KERNEL_OK")
</pallas_src>

<mosaic_0001>
module attributes {stable_mosaic.version = 11 : i64} {
  func.func @generator_kernel(%arg0: memref<32x3xf32, #tpu.memory_space<vmem>>, %arg1: memref<4x8xf32, #tpu.memory_space<vmem>>, %arg2: memref<3x128xf32, #tpu.memory_space<vmem>>, %arg3: memref<32x128xf32, #tpu.memory_space<vmem>>, %arg4: memref<1x128xf32, #tpu.memory_space<vmem>>, %arg5: memref<32x64xf32, #tpu.memory_space<vmem>>, %arg6: memref<1x64xf32, #tpu.memory_space<vmem>>, %arg7: memref<1x64xf32, #tpu.memory_space<vmem>>, %arg8: memref<1x64xf32, #tpu.memory_space<vmem>>, %arg9: memref<64x24xf32, #tpu.memory_space<vmem>>, %arg10: memref<1x24xf32, #tpu.memory_space<vmem>>, %arg11: memref<1x24xf32, #tpu.memory_space<vmem>>, %arg12: memref<1x24xf32, #tpu.memory_space<vmem>>, %arg13: memref<3x128xf32, #tpu.memory_space<vmem>>, %arg14: memref<1x128xf32, #tpu.memory_space<vmem>>, %arg15: memref<24x128xf32, #tpu.memory_space<vmem>>, %arg16: memref<8x128xf32, #tpu.memory_space<vmem>>, %arg17: memref<32x128xf32, #tpu.memory_space<vmem>>, %arg18: memref<1x128xf32, #tpu.memory_space<vmem>>, %arg19: memref<32x3xf32, #tpu.memory_space<vmem>>, %arg20: memref<1x3xf32, #tpu.memory_space<vmem>>, %arg21: memref<8x4x3xf32, #tpu.memory_space<vmem>>) attributes {dimension_semantics = [], scalar_prefetch = 0 : i64, scratch_operands = 0 : i64, tpu.core_type = #tpu.core_type<tc>} {
    %0 = tpu.iota {dimensions = array<i32: 1>} : vector<1x128xi32>
    %c64_i32 = arith.constant 64 : i32
    %1 = vector.broadcast %c64_i32 : i32 to vector<1x128xi32>
    %2 = arith.cmpi sge, %0, %1 : vector<1x128xi32>
    %c96_i32 = arith.constant 96 : i32
    %3 = vector.broadcast %c96_i32 : i32 to vector<1x128xi32>
    %4 = arith.cmpi slt, %0, %3 : vector<1x128xi32>
    %5 = arith.andi %2, %4 : vector<1x128xi1>
    %cst = arith.constant 2.000000e+00 : f32
    %cst_0 = arith.constant 1.000000e+00 : f32
    %6 = vector.broadcast %cst : f32 to vector<1x128xf32>
    %7 = vector.broadcast %cst_0 : f32 to vector<1x128xf32>
    %8 = arith.select %5, %6, %7 : vector<1x128xi1>, vector<1x128xf32>
    %c0 = arith.constant 0 : index
    %c0_1 = arith.constant 0 : index
    %9 = vector.load %arg0[%c0, %c0_1] : memref<32x3xf32, #tpu.memory_space<vmem>>, vector<32x3xf32>
    %c0_2 = arith.constant 0 : index
    %c0_3 = arith.constant 0 : index
    %10 = vector.load %arg3[%c0_2, %c0_3] : memref<32x128xf32, #tpu.memory_space<vmem>>, vector<32x128xf32>
    %c0_4 = arith.constant 0 : index
    %c0_5 = arith.constant 0 : index
    %11 = vector.load %arg2[%c0_4, %c0_5] : memref<3x128xf32, #tpu.memory_space<vmem>>, vector<3x128xf32>
    %cst_6 = arith.constant dense<0.000000e+00> : vector<32x128xf32>
    %12 = tpu.matmul %9, %11, %cst_6 {dimension_numbers = #tpu.dot_dimension_numbers<[1], [0], [0], [1], [0, 0, 1, 1], [], []>} : vector<32x3xf32>, vector<3x128xf32>, vector<32x128xf32> -> vector<32x128xf32>
    %c0_7 = arith.constant 0 : index
    %c0_8 = arith.constant 0 : index
    %13 = vector.load %arg4[%c0_7, %c0_8] : memref<1x128xf32, #tpu.memory_space<vmem>>, vector<1x128xf32>
    %14 = vector.broadcast %13 : vector<1x128xf32> to vector<32x128xf32>
    %15 = arith.addf %12, %14 : vector<32x128xf32>
    %16 = vector.extract_strided_slice %15 {offsets = [0, 0], sizes = [4, 128], strides = [1, 1]} : vector<32x128xf32> to vector<4x128xf32>
    %17 = vector.extract_strided_slice %15 {offsets = [4, 0], sizes = [4, 128], strides = [1, 1]} : vector<32x128xf32> to vector<4x128xf32>
    %18 = vector.extract_strided_slice %15 {offsets = [8, 0], sizes = [4, 128], strides = [1, 1]} : vector<32x128xf32> to vector<4x128xf32>
    %19 = vector.extract_strided_slice %15 {offsets = [12, 0], sizes = [4, 128], strides = [1, 1]} : vector<32x128xf32> to vector<4x128xf32>
    %20 = vector.extract_strided_slice %15 {offsets = [16, 0], sizes = [4, 128], strides = [1, 1]} : vector<32x128xf32> to vector<4x128xf32>
    %21 = vector.extract_strided_slice %15 {offsets = [20, 0], sizes = [4, 128], strides = [1, 1]} : vector<32x128xf32> to vector<4x128xf32>
    %22 = vector.extract_strided_slice %15 {offsets = [24, 0], sizes = [4, 128], strides = [1, 1]} : vector<32x128xf32> to vector<4x128xf32>
    %23 = vector.extract_strided_slice %15 {offsets = [28, 0], sizes = [4, 128], strides = [1, 1]} : vector<32x128xf32> to vector<4x128xf32>
    %cst_9 = arith.constant 0.000000e+00 : f32
    %24 = vector.broadcast %cst_9 : f32 to vector<4x32xf32>
    %cst_10 = arith.constant 0.000000e+00 : f32
    %25 = vector.broadcast %cst_10 : f32 to vector<4x32xf32>
    %cst_11 = arith.constant dense<0.000000e+00> : vector<4x128xf32>
    %26 = tpu.matmul %24, %10, %cst_11 {dimension_numbers = #tpu.dot_dimension_numbers<[1], [0], [0], [1], [0, 0, 1, 1], [], []>} : vector<4x32xf32>, vector<32x128xf32>, vector<4x128xf32> -> vector<4x128xf32>
    %27 = arith.addf %26, %16 : vector<4x128xf32>
    %28 = vector.broadcast %8 : vector<1x128xf32> to vector<4x128xf32>
    %29 = arith.mulf %27, %28 : vector<4x128xf32>
    %30 = arith.negf %29 : vector<4x128xf32>
    %31 = math.exp %30 : vector<4x128xf32>
    %cst_12 = arith.constant 1.000000e+00 : f32
    %32 = vector.broadcast %cst_12 : f32 to vector<4x128xf32>
    %33 = arith.addf %32, %31 : vector<4x128xf32>
    %34 = arith.divf %32, %33 : vector<4x128xf32>
    %35 = vector.extract_strided_slice %34 {offsets = [0, 0], sizes = [4, 32], strides = [1, 1]} : vector<4x128xf32> to vector<4x32xf32>
    %36 = vector.extract_strided_slice %34 {offsets = [0, 32], sizes = [4, 32], strides = [1, 1]} : vector<4x128xf32> to vector<4x32xf32>
    %37 = vector.extract_strided_slice %34 {offsets = [0, 64], sizes = [4, 32], strides = [1, 1]} : vector<4x128xf32> to vector<4x32xf32>
    %cst_13 = arith.constant 2.000000e+00 : f32
    %38 = vector.broadcast %cst_13 : f32 to vector<4x32xf32>
    %39 = arith.mulf %38, %37 : vector<4x32xf32>
    %cst_14 = arith.constant 1.000000e+00 : f32
    %40 = vector.broadcast %cst_14 : f32 to vector<4x32xf32>
    %41 = arith.subf %39, %40 : vector<4x32xf32>
    %42 = vector.extract_strided_slice %34 {offsets = [0, 96], sizes = [4, 32], strides = [1, 1]} : vector<4x128xf32> to vector<4x32xf32>
    %43 = arith.mulf %36, %25 : vector<4x32xf32>
    %44 = arith.mulf %35, %41 : vector<4x32xf32>
    %45 = arith.addf %43, %44 : vector<4x32xf32>
    %46 = math.tanh %45 : vector<4x32xf32>
    %47 = arith.mulf %42, %46 : vector<4x32xf32>
    %cst_15 = arith.constant dense<0.000000e+00> : vector<4x128xf32>
    %48 = tpu.matmul %47, %10, %cst_15 {dimension_numbers = #tpu.dot_dimension_numbers<[1], [0], [0], [1], [0, 0, 1, 1], [], []>} : vector<4x32xf32>, vector<32x128xf32>, vector<4x128xf32> -> vector<4x128xf32>
    %49 = arith.addf %48, %17 : vector<4x128xf32>
    %50 = vector.broadcast %8 : vector<1x128xf32> to vector<4x128xf32>
    %51 = arith.mulf %49, %50 : vector<4x128xf32>
    %52 = arith.negf %51 : vector<4x128xf32>
    %53 = math.exp %52 : vector<4x128xf32>
    %cst_16 = arith.constant 1.000000e+00 : f32
    %54 = vector.broadcast %cst_16 : f32 to vector<4x128xf32>
    %55 = arith.addf %54, %53 : vector<4x128xf32>
    %56 = arith.divf %54, %55 : vector<4x128xf32>
    %57 = vector.extract_strided_slice %56 {offsets = [0, 0], sizes = [4, 32], strides = [1, 1]} : vector<4x128xf32> to vector<4x32xf32>
    %58 = vector.extract_strided_slice %56 {offsets = [0, 32], sizes = [4, 32], strides = [1, 1]} : vector<4x128xf32> to vector<4x32xf32>
    %59 = vector.extract_strided_slice %56 {offsets = [0, 64], sizes = [4, 32], strides = [1, 1]} : vector<4x128xf32> to vector<4x32xf32>
    %cst_17 = arith.constant 2.000000e+00 : f32
    %60 = vector.broadcast %cst_17 : f32 to vector<4x32xf32>
    %61 = arith.mulf %60, %59 : vector<4x32xf32>
    %cst_18 = arith.constant 1.000000e+00 : f32
    %62 = vector.broadcast %cst_18 : f32 to vector<4x32xf32>
    %63 = arith.subf %61, %62 : vector<4x32xf32>
    %64 = vector.extract_strided_slice %56 {offsets = [0, 96], sizes = [4, 32], strides = [1, 1]} : vector<4x128xf32> to vector<4x32xf32>
    %65 = arith.mulf %58, %45 : vector<4x32xf32>
    %66 = arith.mulf %57, %63 : vector<4x32xf32>
    %67 = arith.addf %65, %66 : vector<4x32xf32>
    %68 = math.tanh %67 : vector<4x32xf32>
    %69 = arith.mulf %64, %68 : vector<4x32xf32>
    %cst_19 = arith.constant dense<0.000000e+00> : vector<4x128xf32>
    %70 = tpu.matmul %69, %10, %cst_19 {dimension_numbers = #tpu.dot_dimension_numbers<[1], [0], [0], [1], [0, 0, 1, 1], [], []>} : vector<4x32xf32>, vector<32x128xf32>, vector<4x128xf32> -> vector<4x128xf32>
    %71 = arith.addf %70, %18 : vector<4x128xf32>
    %72 = vector.broadcast %8 : vector<1x128xf32> to vector<4x128xf32>
    %73 = arith.mulf %71, %72 : vector<4x128xf32>
    %74 = arith.negf %73 : vector<4x128xf32>
    %75 = math.exp %74 : vector<4x128xf32>
    %cst_20 = arith.constant 1.000000e+00 : f32
    %76 = vector.broadcast %cst_20 : f32 to vector<4x128xf32>
    %77 = arith.addf %76, %75 : vector<4x128xf32>
    %78 = arith.divf %76, %77 : vector<4x128xf32>
    %79 = vector.extract_strided_slice %78 {offsets = [0, 0], sizes = [4, 32], strides = [1, 1]} : vector<4x128xf32> to vector<4x32xf32>
    %80 = vector.extract_strided_slice %78 {offsets = [0, 32], sizes = [4, 32], strides = [1, 1]} : vector<4x128xf32> to vector<4x32xf32>
    %81 = vector.extract_strided_slice %78 {offsets = [0, 64], sizes = [4, 32], strides = [1, 1]} : vector<4x128xf32> to vector<4x32xf32>
    %cst_21 = arith.constant 2.000000e+00 : f32
    %82 = vector.broadcast %cst_21 : f32 to vector<4x32xf32>
    %83 = arith.mulf %82, %81 : vector<4x32xf32>
    %cst_22 = arith.constant 1.000000e+00 : f32
    %84 = vector.broadcast %cst_22 : f32 to vector<4x32xf32>
    %85 = arith.subf %83, %84 : vector<4x32xf32>
    %86 = vector.extract_strided_slice %78 {offsets = [0, 96], sizes = [4, 32], strides = [1, 1]} : vector<4x128xf32> to vector<4x32xf32>
    %87 = arith.mulf %80, %67 : vector<4x32xf32>
    %88 = arith.mulf %79, %85 : vector<4x32xf32>
    %89 = arith.addf %87, %88 : vector<4x32xf32>
    %90 = math.tanh %89 : vector<4x32xf32>
    %91 = arith.mulf %86, %90 : vector<4x32xf32>
    %cst_23 = arith.constant dense<0.000000e+00> : vector<4x128xf32>
    %92 = tpu.matmul %91, %10, %cst_23 {dimension_numbers = #tpu.dot_dimension_numbers<[1], [0], [0], [1], [0, 0, 1, 1], [], []>} : vector<4x32xf32>, vector<32x128xf32>, vector<4x128xf32> -> vector<4x128xf32>
    %93 = arith.addf %92, %19 : vector<4x128xf32>
    %94 = vector.broadcast %8 : vector<1x128xf32> to vector<4x128xf32>
    %95 = arith.mulf %93, %94 : vector<4x128xf32>
    %96 = arith.negf %95 : vector<4x128xf32>
    %97 = math.exp %96 : vector<4x128xf32>
    %cst_24 = arith.constant 1.000000e+00 : f32
    %98 = vector.broadcast %cst_24 : f32 to vector<4x128xf32>
    %99 = arith.addf %98, %97 : vector<4x128xf32>
    %100 = arith.divf %98, %99 : vector<4x128xf32>
    %101 = vector.extract_strided_slice %100 {offsets = [0, 0], sizes = [4, 32], strides = [1, 1]} : vector<4x128xf32> to vector<4x32xf32>
    %102 = vector.extract_strided_slice %100 {offsets = [0, 32], sizes = [4, 32], strides = [1, 1]} : vector<4x128xf32> to vector<4x32xf32>
    %103 = vector.extract_strided_slice %100 {offsets = [0, 64], sizes = [4, 32], strides = [1, 1]} : vector<4x128xf32> to vector<4x32xf32>
    %cst_25 = arith.constant 2.000000e+00 : f32
    %104 = vector.broadcast %cst_25 : f32 to vector<4x32xf32>
    %105 = arith.mulf %104, %103 : vector<4x32xf32>
    %cst_26 = arith.constant 1.000000e+00 : f32
    %106 = vector.broadcast %cst_26 : f32 to vector<4x32xf32>
    %107 = arith.subf %105, %106 : vector<4x32xf32>
    %108 = vector.extract_strided_slice %100 {offsets = [0, 96], sizes = [4, 32], strides = [1, 1]} : vector<4x128xf32> to vector<4x32xf32>
    %109 = arith.mulf %102, %89 : vector<4x32xf32>
    %110 = arith.mulf %101, %107 : vector<4x32xf32>
    %111 = arith.addf %109, %110 : vector<4x32xf32>
    %112 = math.tanh %111 : vector<4x32xf32>
    %113 = arith.mulf %108, %112 : vector<4x32xf32>
    %cst_27 = arith.constant dense<0.000000e+00> : vector<4x128xf32>
    %114 = tpu.matmul %113, %10, %cst_27 {dimension_numbers = #tpu.dot_dimension_numbers<[1], [0], [0], [1], [0, 0, 1, 1], [], []>} : vector<4x32xf32>, vector<32x128xf32>, vector<4x128xf32> -> vector<4x128xf32>
    %115 = arith.addf %114, %20 : vector<4x128xf32>
    %116 = vector.broadcast %8 : vector<1x128xf32> to vector<4x128xf32>
    %117 = arith.mulf %115, %116 : vector<4x128xf32>
    %118 = arith.negf %117 : vector<4x128xf32>
    %119 = math.exp %118 : vector<4x128xf32>
    %cst_28 = arith.constant 1.000000e+00 : f32
    %120 = vector.broadcast %cst_28 : f32 to vector<4x128xf32>
    %121 = arith.addf %120, %119 : vector<4x128xf32>
    %122 = arith.divf %120, %121 : vector<4x128xf32>
    %123 = vector.extract_strided_slice %122 {offsets = [0, 0], sizes = [4, 32], strides = [1, 1]} : vector<4x128xf32> to vector<4x32xf32>
    %124 = vector.extract_strided_slice %122 {offsets = [0, 32], sizes = [4, 32], strides = [1, 1]} : vector<4x128xf32> to vector<4x32xf32>
    %125 = vector.extract_strided_slice %122 {offsets = [0, 64], sizes = [4, 32], strides = [1, 1]} : vector<4x128xf32> to vector<4x32xf32>
    %cst_29 = arith.constant 2.000000e+00 : f32
    %126 = vector.broadcast %cst_29 : f32 to vector<4x32xf32>
    %127 = arith.mulf %126, %125 : vector<4x32xf32>
    %cst_30 = arith.constant 1.000000e+00 : f32
    %128 = vector.broadcast %cst_30 : f32 to vector<4x32xf32>
    %129 = arith.subf %127, %128 : vector<4x32xf32>
    %130 = vector.extract_strided_slice %122 {offsets = [0, 96], sizes = [4, 32], strides = [1, 1]} : vector<4x128xf32> to vector<4x32xf32>
    %131 = arith.mulf %124, %111 : vector<4x32xf32>
    %132 = arith.mulf %123, %129 : vector<4x32xf32>
    %133 = arith.addf %131, %132 : vector<4x32xf32>
    %134 = math.tanh %133 : vector<4x32xf32>
    %135 = arith.mulf %130, %134 : vector<4x32xf32>
    %cst_31 = arith.constant dense<0.000000e+00> : vector<4x128xf32>
    %136 = tpu.matmul %135, %10, %cst_31 {dimension_numbers = #tpu.dot_dimension_numbers<[1], [0], [0], [1], [0, 0, 1, 1], [], []>} : vector<4x32xf32>, vector<32x128xf32>, vector<4x128xf32> -> vector<4x128xf32>
    %137 = arith.addf %136, %21 : vector<4x128xf32>
    %138 = vector.broadcast %8 : vector<1x128xf32> to vector<4x128xf32>
    %139 = arith.mulf %137, %138 : vector<4x128xf32>
    %140 = arith.negf %139 : vector<4x128xf32>
    %141 = math.exp %140 : vector<4x128xf32>
    %cst_32 = arith.constant 1.000000e+00 : f32
    %142 = vector.broadcast %cst_32 : f32 to vector<4x128xf32>
    %143 = arith.addf %142, %141 : vector<4x128xf32>
    %144 = arith.divf %142, %143 : vector<4x128xf32>
    %145 = vector.extract_strided_slice %144 {offsets = [0, 0], sizes = [4, 32], strides = [1, 1]} : vector<4x128xf32> to vector<4x32xf32>
    %146 = vector.extract_strided_slice %144 {offsets = [0, 32], sizes = [4, 32], strides = [1, 1]} : vector<4x128xf32> to vector<4x32xf32>
    %147 = vector.extract_strided_slice %144 {offsets = [0, 64], sizes = [4, 32], strides = [1, 1]} : vector<4x128xf32> to vector<4x32xf32>
    %cst_33 = arith.constant 2.000000e+00 : f32
    %148 = vector.broadcast %cst_33 : f32 to vector<4x32xf32>
    %149 = arith.mulf %148, %147 : vector<4x32xf32>
    %cst_34 = arith.constant 1.000000e+00 : f32
    %150 = vector.broadcast %cst_34 : f32 to vector<4x32xf32>
    %151 = arith.subf %149, %150 : vector<4x32xf32>
    %152 = vector.extract_strided_slice %144 {offsets = [0, 96], sizes = [4, 32], strides = [1, 1]} : vector<4x128xf32> to vector<4x32xf32>
    %153 = arith.mulf %146, %133 : vector<4x32xf32>
    %154 = arith.mulf %145, %151 : vector<4x32xf32>
    %155 = arith.addf %153, %154 : vector<4x32xf32>
    %156 = math.tanh %155 : vector<4x32xf32>
    %157 = arith.mulf %152, %156 : vector<4x32xf32>
    %cst_35 = arith.constant dense<0.000000e+00> : vector<4x128xf32>
    %158 = tpu.matmul %157, %10, %cst_35 {dimension_numbers = #tpu.dot_dimension_numbers<[1], [0], [0], [1], [0, 0, 1, 1], [], []>} : vector<4x32xf32>, vector<32x128xf32>, vector<4x128xf32> -> vector<4x128xf32>
    %159 = arith.addf %158, %22 : vector<4x128xf32>
    %160 = vector.broadcast %8 : vector<1x128xf32> to vector<4x128xf32>
    %161 = arith.mulf %159, %160 : vector<4x128xf32>
    %162 = arith.negf %161 : vector<4x128xf32>
    %163 = math.exp %162 : vector<4x128xf32>
    %cst_36 = arith.constant 1.000000e+00 : f32
    %164 = vector.broadcast %cst_36 : f32 to vector<4x128xf32>
    %165 = arith.addf %164, %163 : vector<4x128xf32>
    %166 = arith.divf %164, %165 : vector<4x128xf32>
    %167 = vector.extract_strided_slice %166 {offsets = [0, 0], sizes = [4, 32], strides = [1, 1]} : vector<4x128xf32> to vector<4x32xf32>
    %168 = vector.extract_strided_slice %166 {offsets = [0, 32], sizes = [4, 32], strides = [1, 1]} : vector<4x128xf32> to vector<4x32xf32>
    %169 = vector.extract_strided_slice %166 {offsets = [0, 64], sizes = [4, 32], strides = [1, 1]} : vector<4x128xf32> to vector<4x32xf32>
    %cst_37 = arith.constant 2.000000e+00 : f32
    %170 = vector.broadcast %cst_37 : f32 to vector<4x32xf32>
    %171 = arith.mulf %170, %169 : vector<4x32xf32>
    %cst_38 = arith.constant 1.000000e+00 : f32
    %172 = vector.broadcast %cst_38 : f32 to vector<4x32xf32>
    %173 = arith.subf %171, %172 : vector<4x32xf32>
    %174 = vector.extract_strided_slice %166 {offsets = [0, 96], sizes = [4, 32], strides = [1, 1]} : vector<4x128xf32> to vector<4x32xf32>
    %175 = arith.mulf %168, %155 : vector<4x32xf32>
    %176 = arith.mulf %167, %173 : vector<4x32xf32>
    %177 = arith.addf %175, %176 : vector<4x32xf32>
    %178 = math.tanh %177 : vector<4x32xf32>
    %179 = arith.mulf %174, %178 : vector<4x32xf32>
    %cst_39 = arith.constant dense<0.000000e+00> : vector<4x128xf32>
    %180 = tpu.matmul %179, %10, %cst_39 {dimension_numbers = #tpu.dot_dimension_numbers<[1], [0], [0], [1], [0, 0, 1, 1], [], []>} : vector<4x32xf32>, vector<32x128xf32>, vector<4x128xf32> -> vector<4x128xf32>
    %181 = arith.addf %180, %23 : vector<4x128xf32>
    %182 = vector.broadcast %8 : vector<1x128xf32> to vector<4x128xf32>
    %183 = arith.mulf %181, %182 : vector<4x128xf32>
    %184 = arith.negf %183 : vector<4x128xf32>
    %185 = math.exp %184 : vector<4x128xf32>
    %cst_40 = arith.constant 1.000000e+00 : f32
    %186 = vector.broadcast %cst_40 : f32 to vector<4x128xf32>
    %187 = arith.addf %186, %185 : vector<4x128xf32>
    %188 = arith.divf %186, %187 : vector<4x128xf32>
    %189 = vector.extract_strided_slice %188 {offsets = [0, 0], sizes = [4, 32], strides = [1, 1]} : vector<4x128xf32> to vector<4x32xf32>
    %190 = vector.extract_strided_slice %188 {offsets = [0, 32], sizes = [4, 32], strides = [1, 1]} : vector<4x128xf32> to vector<4x32xf32>
    %191 = vector.extract_strided_slice %188 {offsets = [0, 64], sizes = [4, 32], strides = [1, 1]} : vector<4x128xf32> to vector<4x32xf32>
    %cst_41 = arith.constant 2.000000e+00 : f32
    %192 = vector.broadcast %cst_41 : f32 to vector<4x32xf32>
    %193 = arith.mulf %192, %191 : vector<4x32xf32>
    %cst_42 = arith.constant 1.000000e+00 : f32
    %194 = vector.broadcast %cst_42 : f32 to vector<4x32xf32>
    %195 = arith.subf %193, %194 : vector<4x32xf32>
    %196 = vector.extract_strided_slice %188 {offsets = [0, 96], sizes = [4, 32], strides = [1, 1]} : vector<4x128xf32> to vector<4x32xf32>
    %197 = arith.mulf %190, %177 : vector<4x32xf32>
    %198 = arith.mulf %189, %195 : vector<4x32xf32>
    %199 = arith.addf %197, %198 : vector<4x32xf32>
    %200 = math.tanh %199 : vector<4x32xf32>
    %201 = arith.mulf %196, %200 : vector<4x32xf32>
    %c0_43 = arith.constant 0 : index
    %c0_44 = arith.constant 0 : index
    %202 = vector.load %arg5[%c0_43, %c0_44] : memref<32x64xf32, #tpu.memory_space<vmem>>, vector<32x64xf32>
    %cst_45 = arith.constant dense<0.000000e+00> : vector<4x64xf32>
    %203 = tpu.matmul %201, %202, %cst_45 {dimension_numbers = #tpu.dot_dimension_numbers<[1], [0], [0], [1], [0, 0, 1, 1], [], []>} : vector<4x32xf32>, vector<32x64xf32>, vector<4x64xf32> -> vector<4x64xf32>
    %c0_46 = arith.constant 0 : index
    %c0_47 = arith.constant 0 : index
    %204 = vector.load %arg6[%c0_46, %c0_47] : memref<1x64xf32, #tpu.memory_space<vmem>>, vector<1x64xf32>
    %205 = vector.broadcast %204 : vector<1x64xf32> to vector<4x64xf32>
    %206 = arith.addf %203, %205 : vector<4x64xf32>
    %cst_48 = arith.constant dense<0.000000e+00> : vector<64xf32>
    %207 = vector.multi_reduction <add>, %206, %cst_48 [0] : vector<4x64xf32> to vector<64xf32>
    %208 = vector.shape_cast %207 : vector<64xf32> to vector<1x64xf32>
    %cst_49 = arith.constant 4.000000e+00 : f32
    %209 = vector.broadcast %cst_49 : f32 to vector<1x64xf32>
    %210 = arith.divf %208, %209 : vector<1x64xf32>
    %211 = vector.broadcast %210 : vector<1x64xf32> to vector<4x64xf32>
    %212 = arith.subf %206, %211 : vector<4x64xf32>
    %213 = vector.broadcast %210 : vector<1x64xf32> to vector<4x64xf32>
    %214 = arith.subf %206, %213 : vector<4x64xf32>
    %215 = arith.mulf %212, %214 : vector<4x64xf32>
    %cst_50 = arith.constant dense<0.000000e+00> : vector<64xf32>
    %216 = vector.multi_reduction <add>, %215, %cst_50 [0] : vector<4x64xf32> to vector<64xf32>
    %217 = vector.shape_cast %216 : vector<64xf32> to vector<1x64xf32>
    %cst_51 = arith.constant 4.000000e+00 : f32
    %218 = vector.broadcast %cst_51 : f32 to vector<1x64xf32>
    %219 = arith.divf %217, %218 : vector<1x64xf32>
    %220 = vector.broadcast %210 : vector<1x64xf32> to vector<4x64xf32>
    %221 = arith.subf %206, %220 : vector<4x64xf32>
    %cst_52 = arith.constant 9.99999974E-6 : f32
    %222 = vector.broadcast %cst_52 : f32 to vector<1x64xf32>
    %223 = arith.addf %219, %222 : vector<1x64xf32>
    %224 = math.rsqrt %223 : vector<1x64xf32>
    %225 = vector.broadcast %224 : vector<1x64xf32> to vector<4x64xf32>
    %226 = arith.mulf %221, %225 : vector<4x64xf32>
    %c0_53 = arith.constant 0 : index
    %c0_54 = arith.constant 0 : index
    %227 = vector.load %arg7[%c0_53, %c0_54] : memref<1x64xf32, #tpu.memory_space<vmem>>, vector<1x64xf32>
    %228 = vector.broadcast %227 : vector<1x64xf32> to vector<4x64xf32>
    %229 = arith.mulf %226, %228 : vector<4x64xf32>
    %c0_55 = arith.constant 0 : index
    %c0_56 = arith.constant 0 : index
    %230 = vector.load %arg8[%c0_55, %c0_56] : memref<1x64xf32, #tpu.memory_space<vmem>>, vector<1x64xf32>
    %231 = vector.broadcast %230 : vector<1x64xf32> to vector<4x64xf32>
    %232 = arith.addf %229, %231 : vector<4x64xf32>
    %cst_57 = arith.constant 0.000000e+00 : f32
    %233 = vector.broadcast %cst_57 : f32 to vector<4x64xf32>
    %234 = arith.maximumf %232, %233 : vector<4x64xf32>
    %c0_58 = arith.constant 0 : index
    %c0_59 = arith.constant 0 : index
    %235 = vector.load %arg9[%c0_58, %c0_59] : memref<64x24xf32, #tpu.memory_space<vmem>>, vector<64x24xf32>
    %cst_60 = arith.constant dense<0.000000e+00> : vector<4x24xf32>
    %236 = tpu.matmul %234, %235, %cst_60 {dimension_numbers = #tpu.dot_dimension_numbers<[1], [0], [0], [1], [0, 0, 1, 1], [], []>} : vector<4x64xf32>, vector<64x24xf32>, vector<4x24xf32> -> vector<4x24xf32>
    %c0_61 = arith.constant 0 : index
    %c0_62 = arith.constant 0 : index
    %237 = vector.load %arg10[%c0_61, %c0_62] : memref<1x24xf32, #tpu.memory_space<vmem>>, vector<1x24xf32>
    %238 = vector.broadcast %237 : vector<1x24xf32> to vector<4x24xf32>
    %239 = arith.addf %236, %238 : vector<4x24xf32>
    %cst_63 = arith.constant dense<0.000000e+00> : vector<24xf32>
    %240 = vector.multi_reduction <add>, %239, %cst_63 [0] : vector<4x24xf32> to vector<24xf32>
    %241 = vector.shape_cast %240 : vector<24xf32> to vector<1x24xf32>
    %cst_64 = arith.constant 4.000000e+00 : f32
    %242 = vector.broadcast %cst_64 : f32 to vector<1x24xf32>
    %243 = arith.divf %241, %242 : vector<1x24xf32>
    %244 = vector.broadcast %243 : vector<1x24xf32> to vector<4x24xf32>
    %245 = arith.subf %239, %244 : vector<4x24xf32>
    %246 = vector.broadcast %243 : vector<1x24xf32> to vector<4x24xf32>
    %247 = arith.subf %239, %246 : vector<4x24xf32>
    %248 = arith.mulf %245, %247 : vector<4x24xf32>
    %cst_65 = arith.constant dense<0.000000e+00> : vector<24xf32>
    %249 = vector.multi_reduction <add>, %248, %cst_65 [0] : vector<4x24xf32> to vector<24xf32>
    %250 = vector.shape_cast %249 : vector<24xf32> to vector<1x24xf32>
    %cst_66 = arith.constant 4.000000e+00 : f32
    %251 = vector.broadcast %cst_66 : f32 to vector<1x24xf32>
    %252 = arith.divf %250, %251 : vector<1x24xf32>
    %253 = vector.broadcast %243 : vector<1x24xf32> to vector<4x24xf32>
    %254 = arith.subf %239, %253 : vector<4x24xf32>
    %cst_67 = arith.constant 9.99999974E-6 : f32
    %255 = vector.broadcast %cst_67 : f32 to vector<1x24xf32>
    %256 = arith.addf %252, %255 : vector<1x24xf32>
    %257 = math.rsqrt %256 : vector<1x24xf32>
    %258 = vector.broadcast %257 : vector<1x24xf32> to vector<4x24xf32>
    %259 = arith.mulf %254, %258 : vector<4x24xf32>
    %c0_68 = arith.constant 0 : index
    %c0_69 = arith.constant 0 : index
    %260 = vector.load %arg11[%c0_68, %c0_69] : memref<1x24xf32, #tpu.memory_space<vmem>>, vector<1x24xf32>
    %261 = vector.broadcast %260 : vector<1x24xf32> to vector<4x24xf32>
    %262 = arith.mulf %259, %261 : vector<4x24xf32>
    %c0_70 = arith.constant 0 : index
    %c0_71 = arith.constant 0 : index
    %263 = vector.load %arg12[%c0_70, %c0_71] : memref<1x24xf32, #tpu.memory_space<vmem>>, vector<1x24xf32>
    %264 = vector.broadcast %263 : vector<1x24xf32> to vector<4x24xf32>
    %265 = arith.addf %262, %264 : vector<4x24xf32>
    %cst_72 = arith.constant 0.000000e+00 : f32
    %266 = vector.broadcast %cst_72 : f32 to vector<4x24xf32>
    %267 = arith.maximumf %265, %266 : vector<4x24xf32>
    %c0_73 = arith.constant 0 : index
    %c0_74 = arith.constant 0 : index
    %268 = vector.load %arg17[%c0_73, %c0_74] : memref<32x128xf32, #tpu.memory_space<vmem>>, vector<32x128xf32>
    %c0_75 = arith.constant 0 : index
    %c0_76 = arith.constant 0 : index
    %269 = vector.load %arg18[%c0_75, %c0_76] : memref<1x128xf32, #tpu.memory_space<vmem>>, vector<1x128xf32>
    %c0_77 = arith.constant 0 : index
    %c0_78 = arith.constant 0 : index
    %270 = vector.load %arg19[%c0_77, %c0_78] : memref<32x3xf32, #tpu.memory_space<vmem>>, vector<32x3xf32>
    %c0_79 = arith.constant 0 : index
    %c0_80 = arith.constant 0 : index
    %271 = vector.load %arg20[%c0_79, %c0_80] : memref<1x3xf32, #tpu.memory_space<vmem>>, vector<1x3xf32>
    %272 = vector.extract_strided_slice %9 {offsets = [28, 0], sizes = [4, 3], strides = [1, 1]} : vector<32x3xf32> to vector<4x3xf32>
    %c0_81 = arith.constant 0 : index
    %c0_82 = arith.constant 0 : index
    %273 = vector.load %arg13[%c0_81, %c0_82] : memref<3x128xf32, #tpu.memory_space<vmem>>, vector<3x128xf32>
    %cst_83 = arith.constant dense<0.000000e+00> : vector<4x128xf32>
    %274 = tpu.matmul %272, %273, %cst_83 {dimension_numbers = #tpu.dot_dimension_numbers<[1], [0], [0], [1], [0, 0, 1, 1], [], []>} : vector<4x3xf32>, vector<3x128xf32>, vector<4x128xf32> -> vector<4x128xf32>
    %c0_84 = arith.constant 0 : index
    %c0_85 = arith.constant 0 : index
    %275 = vector.load %arg15[%c0_84, %c0_85] : memref<24x128xf32, #tpu.memory_space<vmem>>, vector<24x128xf32>
    %cst_86 = arith.constant dense<0.000000e+00> : vector<4x128xf32>
    %276 = tpu.matmul %267, %275, %cst_86 {dimension_numbers = #tpu.dot_dimension_numbers<[1], [0], [0], [1], [0, 0, 1, 1], [], []>} : vector<4x24xf32>, vector<24x128xf32>, vector<4x128xf32> -> vector<4x128xf32>
    %277 = arith.addf %274, %276 : vector<4x128xf32>
    %c0_87 = arith.constant 0 : index
    %c0_88 = arith.constant 0 : index
    %278 = vector.load %arg1[%c0_87, %c0_88] : memref<4x8xf32, #tpu.memory_space<vmem>>, vector<4x8xf32>
    %c0_89 = arith.constant 0 : index
    %c0_90 = arith.constant 0 : index
    %279 = vector.load %arg16[%c0_89, %c0_90] : memref<8x128xf32, #tpu.memory_space<vmem>>, vector<8x128xf32>
    %cst_91 = arith.constant dense<0.000000e+00> : vector<4x128xf32>
    %280 = tpu.matmul %278, %279, %cst_91 {dimension_numbers = #tpu.dot_dimension_numbers<[1], [0], [0], [1], [0, 0, 1, 1], [], []>} : vector<4x8xf32>, vector<8x128xf32>, vector<4x128xf32> -> vector<4x128xf32>
    %281 = arith.addf %277, %280 : vector<4x128xf32>
    %c0_92 = arith.constant 0 : index
    %c0_93 = arith.constant 0 : index
    %282 = vector.load %arg14[%c0_92, %c0_93] : memref<1x128xf32, #tpu.memory_space<vmem>>, vector<1x128xf32>
    %283 = vector.broadcast %282 : vector<1x128xf32> to vector<4x128xf32>
    %284 = arith.addf %281, %283 : vector<4x128xf32>
    %cst_94 = arith.constant 0.000000e+00 : f32
    %285 = vector.broadcast %cst_94 : f32 to vector<4x32xf32>
    %286 = vector.broadcast %8 : vector<1x128xf32> to vector<4x128xf32>
    %287 = arith.mulf %284, %286 : vector<4x128xf32>
    %288 = arith.negf %287 : vector<4x128xf32>
    %289 = math.exp %288 : vector<4x128xf32>
    %cst_95 = arith.constant 1.000000e+00 : f32
    %290 = vector.broadcast %cst_95 : f32 to vector<4x128xf32>
    %291 = arith.addf %290, %289 : vector<4x128xf32>
    %292 = arith.divf %290, %291 : vector<4x128xf32>
    %293 = vector.extract_strided_slice %292 {offsets = [0, 0], sizes = [4, 32], strides = [1, 1]} : vector<4x128xf32> to vector<4x32xf32>
    %294 = vector.extract_strided_slice %292 {offsets = [0, 32], sizes = [4, 32], strides = [1, 1]} : vector<4x128xf32> to vector<4x32xf32>
    %295 = vector.extract_strided_slice %292 {offsets = [0, 64], sizes = [4, 32], strides = [1, 1]} : vector<4x128xf32> to vector<4x32xf32>
    %cst_96 = arith.constant 2.000000e+00 : f32
    %296 = vector.broadcast %cst_96 : f32 to vector<4x32xf32>
    %297 = arith.mulf %296, %295 : vector<4x32xf32>
    %cst_97 = arith.constant 1.000000e+00 : f32
    %298 = vector.broadcast %cst_97 : f32 to vector<4x32xf32>
    %299 = arith.subf %297, %298 : vector<4x32xf32>
    %300 = vector.extract_strided_slice %292 {offsets = [0, 96], sizes = [4, 32], strides = [1, 1]} : vector<4x128xf32> to vector<4x32xf32>
    %301 = arith.mulf %294, %285 : vector<4x32xf32>
    %302 = arith.mulf %293, %299 : vector<4x32xf32>
    %303 = arith.addf %301, %302 : vector<4x32xf32>
    %304 = math.tanh %303 : vector<4x32xf32>
    %305 = arith.mulf %300, %304 : vector<4x32xf32>
    %cst_98 = arith.constant dense<0.000000e+00> : vector<4x128xf32>
    %306 = tpu.matmul %305, %268, %cst_98 {dimension_numbers = #tpu.dot_dimension_numbers<[1], [0], [0], [1], [0, 0, 1, 1], [], []>} : vector<4x32xf32>, vector<32x128xf32>, vector<4x128xf32> -> vector<4x128xf32>
    %307 = vector.broadcast %269 : vector<1x128xf32> to vector<4x128xf32>
    %308 = arith.addf %306, %307 : vector<4x128xf32>
    %309 = vector.broadcast %8 : vector<1x128xf32> to vector<4x128xf32>
    %310 = arith.mulf %308, %309 : vector<4x128xf32>
    %311 = arith.negf %310 : vector<4x128xf32>
    %312 = math.exp %311 : vector<4x128xf32>
    %cst_99 = arith.constant 1.000000e+00 : f32
    %313 = vector.broadcast %cst_99 : f32 to vector<4x128xf32>
    %314 = arith.addf %313, %312 : vector<4x128xf32>
    %315 = arith.divf %313, %314 : vector<4x128xf32>
    %316 = vector.extract_strided_slice %315 {offsets = [0, 0], sizes = [4, 32], strides = [1, 1]} : vector<4x128xf32> to vector<4x32xf32>
    %317 = vector.extract_strided_slice %315 {offsets = [0, 32], sizes = [4, 32], strides = [1, 1]} : vector<4x128xf32> to vector<4x32xf32>
    %318 = vector.extract_strided_slice %315 {offsets = [0, 64], sizes = [4, 32], strides = [1, 1]} : vector<4x128xf32> to vector<4x32xf32>
    %cst_100 = arith.constant 2.000000e+00 : f32
    %319 = vector.broadcast %cst_100 : f32 to vector<4x32xf32>
    %320 = arith.mulf %319, %318 : vector<4x32xf32>
    %cst_101 = arith.constant 1.000000e+00 : f32
    %321 = vector.broadcast %cst_101 : f32 to vector<4x32xf32>
    %322 = arith.subf %320, %321 : vector<4x32xf32>
    %323 = vector.extract_strided_slice %315 {offsets = [0, 96], sizes = [4, 32], strides = [1, 1]} : vector<4x128xf32> to vector<4x32xf32>
    %324 = arith.mulf %317, %303 : vector<4x32xf32>
    %325 = arith.mulf %316, %322 : vector<4x32xf32>
    %326 = arith.addf %324, %325 : vector<4x32xf32>
    %327 = math.tanh %326 : vector<4x32xf32>
    %328 = arith.mulf %323, %327 : vector<4x32xf32>
    %cst_102 = arith.constant dense<0.000000e+00> : vector<4x128xf32>
    %329 = tpu.matmul %328, %268, %cst_102 {dimension_numbers = #tpu.dot_dimension_numbers<[1], [0], [0], [1], [0, 0, 1, 1], [], []>} : vector<4x32xf32>, vector<32x128xf32>, vector<4x128xf32> -> vector<4x128xf32>
    %330 = vector.broadcast %269 : vector<1x128xf32> to vector<4x128xf32>
    %331 = arith.addf %329, %330 : vector<4x128xf32>
    %332 = vector.broadcast %8 : vector<1x128xf32> to vector<4x128xf32>
    %333 = arith.mulf %331, %332 : vector<4x128xf32>
    %334 = arith.negf %333 : vector<4x128xf32>
    %335 = math.exp %334 : vector<4x128xf32>
    %cst_103 = arith.constant 1.000000e+00 : f32
    %336 = vector.broadcast %cst_103 : f32 to vector<4x128xf32>
    %337 = arith.addf %336, %335 : vector<4x128xf32>
    %338 = arith.divf %336, %337 : vector<4x128xf32>
    %339 = vector.extract_strided_slice %338 {offsets = [0, 0], sizes = [4, 32], strides = [1, 1]} : vector<4x128xf32> to vector<4x32xf32>
    %340 = vector.extract_strided_slice %338 {offsets = [0, 32], sizes = [4, 32], strides = [1, 1]} : vector<4x128xf32> to vector<4x32xf32>
    %341 = vector.extract_strided_slice %338 {offsets = [0, 64], sizes = [4, 32], strides = [1, 1]} : vector<4x128xf32> to vector<4x32xf32>
    %cst_104 = arith.constant 2.000000e+00 : f32
    %342 = vector.broadcast %cst_104 : f32 to vector<4x32xf32>
    %343 = arith.mulf %342, %341 : vector<4x32xf32>
    %cst_105 = arith.constant 1.000000e+00 : f32
    %344 = vector.broadcast %cst_105 : f32 to vector<4x32xf32>
    %345 = arith.subf %343, %344 : vector<4x32xf32>
    %346 = vector.extract_strided_slice %338 {offsets = [0, 96], sizes = [4, 32], strides = [1, 1]} : vector<4x128xf32> to vector<4x32xf32>
    %347 = arith.mulf %340, %326 : vector<4x32xf32>
    %348 = arith.mulf %339, %345 : vector<4x32xf32>
    %349 = arith.addf %347, %348 : vector<4x32xf32>
    %350 = math.tanh %349 : vector<4x32xf32>
    %351 = arith.mulf %346, %350 : vector<4x32xf32>
    %cst_106 = arith.constant dense<0.000000e+00> : vector<4x128xf32>
    %352 = tpu.matmul %351, %268, %cst_106 {dimension_numbers = #tpu.dot_dimension_numbers<[1], [0], [0], [1], [0, 0, 1, 1], [], []>} : vector<4x32xf32>, vector<32x128xf32>, vector<4x128xf32> -> vector<4x128xf32>
    %353 = vector.broadcast %269 : vector<1x128xf32> to vector<4x128xf32>
    %354 = arith.addf %352, %353 : vector<4x128xf32>
    %355 = vector.broadcast %8 : vector<1x128xf32> to vector<4x128xf32>
    %356 = arith.mulf %354, %355 : vector<4x128xf32>
    %357 = arith.negf %356 : vector<4x128xf32>
    %358 = math.exp %357 : vector<4x128xf32>
    %cst_107 = arith.constant 1.000000e+00 : f32
    %359 = vector.broadcast %cst_107 : f32 to vector<4x128xf32>
    %360 = arith.addf %359, %358 : vector<4x128xf32>
    %361 = arith.divf %359, %360 : vector<4x128xf32>
    %362 = vector.extract_strided_slice %361 {offsets = [0, 0], sizes = [4, 32], strides = [1, 1]} : vector<4x128xf32> to vector<4x32xf32>
    %363 = vector.extract_strided_slice %361 {offsets = [0, 32], sizes = [4, 32], strides = [1, 1]} : vector<4x128xf32> to vector<4x32xf32>
    %364 = vector.extract_strided_slice %361 {offsets = [0, 64], sizes = [4, 32], strides = [1, 1]} : vector<4x128xf32> to vector<4x32xf32>
    %cst_108 = arith.constant 2.000000e+00 : f32
    %365 = vector.broadcast %cst_108 : f32 to vector<4x32xf32>
    %366 = arith.mulf %365, %364 : vector<4x32xf32>
    %cst_109 = arith.constant 1.000000e+00 : f32
    %367 = vector.broadcast %cst_109 : f32 to vector<4x32xf32>
    %368 = arith.subf %366, %367 : vector<4x32xf32>
    %369 = vector.extract_strided_slice %361 {offsets = [0, 96], sizes = [4, 32], strides = [1, 1]} : vector<4x128xf32> to vector<4x32xf32>
    %370 = arith.mulf %363, %349 : vector<4x32xf32>
    %371 = arith.mulf %362, %368 : vector<4x32xf32>
    %372 = arith.addf %370, %371 : vector<4x32xf32>
    %373 = math.tanh %372 : vector<4x32xf32>
    %374 = arith.mulf %369, %373 : vector<4x32xf32>
    %cst_110 = arith.constant dense<0.000000e+00> : vector<4x128xf32>
    %375 = tpu.matmul %374, %268, %cst_110 {dimension_numbers = #tpu.dot_dimension_numbers<[1], [0], [0], [1], [0, 0, 1, 1], [], []>} : vector<4x32xf32>, vector<32x128xf32>, vector<4x128xf32> -> vector<4x128xf32>
    %376 = vector.broadcast %269 : vector<1x128xf32> to vector<4x128xf32>
    %377 = arith.addf %375, %376 : vector<4x128xf32>
    %378 = vector.broadcast %8 : vector<1x128xf32> to vector<4x128xf32>
    %379 = arith.mulf %377, %378 : vector<4x128xf32>
    %380 = arith.negf %379 : vector<4x128xf32>
    %381 = math.exp %380 : vector<4x128xf32>
    %cst_111 = arith.constant 1.000000e+00 : f32
    %382 = vector.broadcast %cst_111 : f32 to vector<4x128xf32>
    %383 = arith.addf %382, %381 : vector<4x128xf32>
    %384 = arith.divf %382, %383 : vector<4x128xf32>
    %385 = vector.extract_strided_slice %384 {offsets = [0, 0], sizes = [4, 32], strides = [1, 1]} : vector<4x128xf32> to vector<4x32xf32>
    %386 = vector.extract_strided_slice %384 {offsets = [0, 32], sizes = [4, 32], strides = [1, 1]} : vector<4x128xf32> to vector<4x32xf32>
    %387 = vector.extract_strided_slice %384 {offsets = [0, 64], sizes = [4, 32], strides = [1, 1]} : vector<4x128xf32> to vector<4x32xf32>
    %cst_112 = arith.constant 2.000000e+00 : f32
    %388 = vector.broadcast %cst_112 : f32 to vector<4x32xf32>
    %389 = arith.mulf %388, %387 : vector<4x32xf32>
    %cst_113 = arith.constant 1.000000e+00 : f32
    %390 = vector.broadcast %cst_113 : f32 to vector<4x32xf32>
    %391 = arith.subf %389, %390 : vector<4x32xf32>
    %392 = vector.extract_strided_slice %384 {offsets = [0, 96], sizes = [4, 32], strides = [1, 1]} : vector<4x128xf32> to vector<4x32xf32>
    %393 = arith.mulf %386, %372 : vector<4x32xf32>
    %394 = arith.mulf %385, %391 : vector<4x32xf32>
    %395 = arith.addf %393, %394 : vector<4x32xf32>
    %396 = math.tanh %395 : vector<4x32xf32>
    %397 = arith.mulf %392, %396 : vector<4x32xf32>
    %cst_114 = arith.constant dense<0.000000e+00> : vector<4x128xf32>
    %398 = tpu.matmul %397, %268, %cst_114 {dimension_numbers = #tpu.dot_dimension_numbers<[1], [0], [0], [1], [0, 0, 1, 1], [], []>} : vector<4x32xf32>, vector<32x128xf32>, vector<4x128xf32> -> vector<4x128xf32>
    %399 = vector.broadcast %269 : vector<1x128xf32> to vector<4x128xf32>
    %400 = arith.addf %398, %399 : vector<4x128xf32>
    %401 = vector.broadcast %8 : vector<1x128xf32> to vector<4x128xf32>
    %402 = arith.mulf %400, %401 : vector<4x128xf32>
    %403 = arith.negf %402 : vector<4x128xf32>
    %404 = math.exp %403 : vector<4x128xf32>
    %cst_115 = arith.constant 1.000000e+00 : f32
    %405 = vector.broadcast %cst_115 : f32 to vector<4x128xf32>
    %406 = arith.addf %405, %404 : vector<4x128xf32>
    %407 = arith.divf %405, %406 : vector<4x128xf32>
    %408 = vector.extract_strided_slice %407 {offsets = [0, 0], sizes = [4, 32], strides = [1, 1]} : vector<4x128xf32> to vector<4x32xf32>
    %409 = vector.extract_strided_slice %407 {offsets = [0, 32], sizes = [4, 32], strides = [1, 1]} : vector<4x128xf32> to vector<4x32xf32>
    %410 = vector.extract_strided_slice %407 {offsets = [0, 64], sizes = [4, 32], strides = [1, 1]} : vector<4x128xf32> to vector<4x32xf32>
    %cst_116 = arith.constant 2.000000e+00 : f32
    %411 = vector.broadcast %cst_116 : f32 to vector<4x32xf32>
    %412 = arith.mulf %411, %410 : vector<4x32xf32>
    %cst_117 = arith.constant 1.000000e+00 : f32
    %413 = vector.broadcast %cst_117 : f32 to vector<4x32xf32>
    %414 = arith.subf %412, %413 : vector<4x32xf32>
    %415 = vector.extract_strided_slice %407 {offsets = [0, 96], sizes = [4, 32], strides = [1, 1]} : vector<4x128xf32> to vector<4x32xf32>
    %416 = arith.mulf %409, %395 : vector<4x32xf32>
    %417 = arith.mulf %408, %414 : vector<4x32xf32>
    %418 = arith.addf %416, %417 : vector<4x32xf32>
    %419 = math.tanh %418 : vector<4x32xf32>
    %420 = arith.mulf %415, %419 : vector<4x32xf32>
    %cst_118 = arith.constant dense<0.000000e+00> : vector<4x128xf32>
    %421 = tpu.matmul %420, %268, %cst_118 {dimension_numbers = #tpu.dot_dimension_numbers<[1], [0], [0], [1], [0, 0, 1, 1], [], []>} : vector<4x32xf32>, vector<32x128xf32>, vector<4x128xf32> -> vector<4x128xf32>
    %422 = vector.broadcast %269 : vector<1x128xf32> to vector<4x128xf32>
    %423 = arith.addf %421, %422 : vector<4x128xf32>
    %424 = vector.broadcast %8 : vector<1x128xf32> to vector<4x128xf32>
    %425 = arith.mulf %423, %424 : vector<4x128xf32>
    %426 = arith.negf %425 : vector<4x128xf32>
    %427 = math.exp %426 : vector<4x128xf32>
    %cst_119 = arith.constant 1.000000e+00 : f32
    %428 = vector.broadcast %cst_119 : f32 to vector<4x128xf32>
    %429 = arith.addf %428, %427 : vector<4x128xf32>
    %430 = arith.divf %428, %429 : vector<4x128xf32>
    %431 = vector.extract_strided_slice %430 {offsets = [0, 0], sizes = [4, 32], strides = [1, 1]} : vector<4x128xf32> to vector<4x32xf32>
    %432 = vector.extract_strided_slice %430 {offsets = [0, 32], sizes = [4, 32], strides = [1, 1]} : vector<4x128xf32> to vector<4x32xf32>
    %433 = vector.extract_strided_slice %430 {offsets = [0, 64], sizes = [4, 32], strides = [1, 1]} : vector<4x128xf32> to vector<4x32xf32>
    %cst_120 = arith.constant 2.000000e+00 : f32
    %434 = vector.broadcast %cst_120 : f32 to vector<4x32xf32>
    %435 = arith.mulf %434, %433 : vector<4x32xf32>
    %cst_121 = arith.constant 1.000000e+00 : f32
    %436 = vector.broadcast %cst_121 : f32 to vector<4x32xf32>
    %437 = arith.subf %435, %436 : vector<4x32xf32>
    %438 = vector.extract_strided_slice %430 {offsets = [0, 96], sizes = [4, 32], strides = [1, 1]} : vector<4x128xf32> to vector<4x32xf32>
    %439 = arith.mulf %432, %418 : vector<4x32xf32>
    %440 = arith.mulf %431, %437 : vector<4x32xf32>
    %441 = arith.addf %439, %440 : vector<4x32xf32>
    %442 = math.tanh %441 : vector<4x32xf32>
    %443 = arith.mulf %438, %442 : vector<4x32xf32>
    %cst_122 = arith.constant dense<0.000000e+00> : vector<4x128xf32>
    %444 = tpu.matmul %443, %268, %cst_122 {dimension_numbers = #tpu.dot_dimension_numbers<[1], [0], [0], [1], [0, 0, 1, 1], [], []>} : vector<4x32xf32>, vector<32x128xf32>, vector<4x128xf32> -> vector<4x128xf32>
    %445 = vector.broadcast %269 : vector<1x128xf32> to vector<4x128xf32>
    %446 = arith.addf %444, %445 : vector<4x128xf32>
    %447 = vector.broadcast %8 : vector<1x128xf32> to vector<4x128xf32>
    %448 = arith.mulf %446, %447 : vector<4x128xf32>
    %449 = arith.negf %448 : vector<4x128xf32>
    %450 = math.exp %449 : vector<4x128xf32>
    %cst_123 = arith.constant 1.000000e+00 : f32
    %451 = vector.broadcast %cst_123 : f32 to vector<4x128xf32>
    %452 = arith.addf %451, %450 : vector<4x128xf32>
    %453 = arith.divf %451, %452 : vector<4x128xf32>
    %454 = vector.extract_strided_slice %453 {offsets = [0, 0], sizes = [4, 32], strides = [1, 1]} : vector<4x128xf32> to vector<4x32xf32>
    %455 = vector.extract_strided_slice %453 {offsets = [0, 32], sizes = [4, 32], strides = [1, 1]} : vector<4x128xf32> to vector<4x32xf32>
    %456 = vector.extract_strided_slice %453 {offsets = [0, 64], sizes = [4, 32], strides = [1, 1]} : vector<4x128xf32> to vector<4x32xf32>
    %cst_124 = arith.constant 2.000000e+00 : f32
    %457 = vector.broadcast %cst_124 : f32 to vector<4x32xf32>
    %458 = arith.mulf %457, %456 : vector<4x32xf32>
    %cst_125 = arith.constant 1.000000e+00 : f32
    %459 = vector.broadcast %cst_125 : f32 to vector<4x32xf32>
    %460 = arith.subf %458, %459 : vector<4x32xf32>
    %461 = vector.extract_strided_slice %453 {offsets = [0, 96], sizes = [4, 32], strides = [1, 1]} : vector<4x128xf32> to vector<4x32xf32>
    %462 = arith.mulf %455, %441 : vector<4x32xf32>
    %463 = arith.mulf %454, %460 : vector<4x32xf32>
    %464 = arith.addf %462, %463 : vector<4x32xf32>
    %465 = math.tanh %464 : vector<4x32xf32>
    %466 = arith.mulf %461, %465 : vector<4x32xf32>
    %cst_126 = arith.constant dense<0.000000e+00> : vector<4x3xf32>
    %467 = tpu.matmul %305, %270, %cst_126 {dimension_numbers = #tpu.dot_dimension_numbers<[1], [0], [0], [1], [0, 0, 1, 1], [], []>} : vector<4x32xf32>, vector<32x3xf32>, vector<4x3xf32> -> vector<4x3xf32>
    %468 = vector.broadcast %271 : vector<1x3xf32> to vector<4x3xf32>
    %469 = arith.addf %467, %468 : vector<4x3xf32>
    %c0_127 = arith.constant 0 : index
    %c0_128 = arith.constant 0 : index
    %c0_129 = arith.constant 0 : index
    %470 = vector.load %arg21[%c0_127, %c0_128, %c0_129] : memref<8x4x3xf32, #tpu.memory_space<vmem>>, vector<1x4x3xf32>
    %471 = vector.shape_cast %470 : vector<1x4x3xf32> to vector<4x3xf32>
    %472 = vector.shape_cast %469 : vector<4x3xf32> to vector<1x4x3xf32>
    tpu.vector_store %arg21[%c0_127, %c0_128, %c0_129], %472 {strides = array<i32>} : memref<8x4x3xf32, #tpu.memory_space<vmem>>, vector<1x4x3xf32>,
    %cst_130 = arith.constant dense<0.000000e+00> : vector<4x3xf32>
    %473 = tpu.matmul %328, %270, %cst_130 {dimension_numbers = #tpu.dot_dimension_numbers<[1], [0], [0], [1], [0, 0, 1, 1], [], []>} : vector<4x32xf32>, vector<32x3xf32>, vector<4x3xf32> -> vector<4x3xf32>
    %474 = vector.broadcast %271 : vector<1x3xf32> to vector<4x3xf32>
    %475 = arith.addf %473, %474 : vector<4x3xf32>
    %c1 = arith.constant 1 : index
    %c0_131 = arith.constant 0 : index
    %c0_132 = arith.constant 0 : index
    %476 = vector.load %arg21[%c1, %c0_131, %c0_132] : memref<8x4x3xf32, #tpu.memory_space<vmem>>, vector<1x4x3xf32>
    %477 = vector.shape_cast %476 : vector<1x4x3xf32> to vector<4x3xf32>
    %478 = vector.shape_cast %475 : vector<4x3xf32> to vector<1x4x3xf32>
    tpu.vector_store %arg21[%c1, %c0_131, %c0_132], %478 {strides = array<i32>} : memref<8x4x3xf32, #tpu.memory_space<vmem>>, vector<1x4x3xf32>,
    %cst_133 = arith.constant dense<0.000000e+00> : vector<4x3xf32>
    %479 = tpu.matmul %351, %270, %cst_133 {dimension_numbers = #tpu.dot_dimension_numbers<[1], [0], [0], [1], [0, 0, 1, 1], [], []>} : vector<4x32xf32>, vector<32x3xf32>, vector<4x3xf32> -> vector<4x3xf32>
    %480 = vector.broadcast %271 : vector<1x3xf32> to vector<4x3xf32>
    %481 = arith.addf %479, %480 : vector<4x3xf32>
    %c2 = arith.constant 2 : index
    %c0_134 = arith.constant 0 : index
    %c0_135 = arith.constant 0 : index
    %482 = vector.load %arg21[%c2, %c0_134, %c0_135] : memref<8x4x3xf32, #tpu.memory_space<vmem>>, vector<1x4x3xf32>
    %483 = vector.shape_cast %482 : vector<1x4x3xf32> to vector<4x3xf32>
    %484 = vector.shape_cast %481 : vector<4x3xf32> to vector<1x4x3xf32>
    tpu.vector_store %arg21[%c2, %c0_134, %c0_135], %484 {strides = array<i32>} : memref<8x4x3xf32, #tpu.memory_space<vmem>>, vector<1x4x3xf32>,
    %cst_136 = arith.constant dense<0.000000e+00> : vector<4x3xf32>
    %485 = tpu.matmul %374, %270, %cst_136 {dimension_numbers = #tpu.dot_dimension_numbers<[1], [0], [0], [1], [0, 0, 1, 1], [], []>} : vector<4x32xf32>, vector<32x3xf32>, vector<4x3xf32> -> vector<4x3xf32>
    %486 = vector.broadcast %271 : vector<1x3xf32> to vector<4x3xf32>
    %487 = arith.addf %485, %486 : vector<4x3xf32>
    %c3 = arith.constant 3 : index
    %c0_137 = arith.constant 0 : index
    %c0_138 = arith.constant 0 : index
    %488 = vector.load %arg21[%c3, %c0_137, %c0_138] : memref<8x4x3xf32, #tpu.memory_space<vmem>>, vector<1x4x3xf32>
    %489 = vector.shape_cast %488 : vector<1x4x3xf32> to vector<4x3xf32>
    %490 = vector.shape_cast %487 : vector<4x3xf32> to vector<1x4x3xf32>
    tpu.vector_store %arg21[%c3, %c0_137, %c0_138], %490 {strides = array<i32>} : memref<8x4x3xf32, #tpu.memory_space<vmem>>, vector<1x4x3xf32>,
    %cst_139 = arith.constant dense<0.000000e+00> : vector<4x3xf32>
    %491 = tpu.matmul %397, %270, %cst_139 {dimension_numbers = #tpu.dot_dimension_numbers<[1], [0], [0], [1], [0, 0, 1, 1], [], []>} : vector<4x32xf32>, vector<32x3xf32>, vector<4x3xf32> -> vector<4x3xf32>
    %492 = vector.broadcast %271 : vector<1x3xf32> to vector<4x3xf32>
    %493 = arith.addf %491, %492 : vector<4x3xf32>
    %c4 = arith.constant 4 : index
    %c0_140 = arith.constant 0 : index
    %c0_141 = arith.constant 0 : index
    %494 = vector.load %arg21[%c4, %c0_140, %c0_141] : memref<8x4x3xf32, #tpu.memory_space<vmem>>, vector<1x4x3xf32>
    %495 = vector.shape_cast %494 : vector<1x4x3xf32> to vector<4x3xf32>
    %496 = vector.shape_cast %493 : vector<4x3xf32> to vector<1x4x3xf32>
    tpu.vector_store %arg21[%c4, %c0_140, %c0_141], %496 {strides = array<i32>} : memref<8x4x3xf32, #tpu.memory_space<vmem>>, vector<1x4x3xf32>,
    %cst_142 = arith.constant dense<0.000000e+00> : vector<4x3xf32>
    %497 = tpu.matmul %420, %270, %cst_142 {dimension_numbers = #tpu.dot_dimension_numbers<[1], [0], [0], [1], [0, 0, 1, 1], [], []>} : vector<4x32xf32>, vector<32x3xf32>, vector<4x3xf32> -> vector<4x3xf32>
    %498 = vector.broadcast %271 : vector<1x3xf32> to vector<4x3xf32>
    %499 = arith.addf %497, %498 : vector<4x3xf32>
    %c5 = arith.constant 5 : index
    %c0_143 = arith.constant 0 : index
    %c0_144 = arith.constant 0 : index
    %500 = vector.load %arg21[%c5, %c0_143, %c0_144] : memref<8x4x3xf32, #tpu.memory_space<vmem>>, vector<1x4x3xf32>
    %501 = vector.shape_cast %500 : vector<1x4x3xf32> to vector<4x3xf32>
    %502 = vector.shape_cast %499 : vector<4x3xf32> to vector<1x4x3xf32>
    tpu.vector_store %arg21[%c5, %c0_143, %c0_144], %502 {strides = array<i32>} : memref<8x4x3xf32, #tpu.memory_space<vmem>>, vector<1x4x3xf32>,
    %cst_145 = arith.constant dense<0.000000e+00> : vector<4x3xf32>
    %503 = tpu.matmul %443, %270, %cst_145 {dimension_numbers = #tpu.dot_dimension_numbers<[1], [0], [0], [1], [0, 0, 1, 1], [], []>} : vector<4x32xf32>, vector<32x3xf32>, vector<4x3xf32> -> vector<4x3xf32>
    %504 = vector.broadcast %271 : vector<1x3xf32> to vector<4x3xf32>
    %505 = arith.addf %503, %504 : vector<4x3xf32>
    %c6 = arith.constant 6 : index
    %c0_146 = arith.constant 0 : index
    %c0_147 = arith.constant 0 : index
    %506 = vector.load %arg21[%c6, %c0_146, %c0_147] : memref<8x4x3xf32, #tpu.memory_space<vmem>>, vector<1x4x3xf32>
    %507 = vector.shape_cast %506 : vector<1x4x3xf32> to vector<4x3xf32>
    %508 = vector.shape_cast %505 : vector<4x3xf32> to vector<1x4x3xf32>
    tpu.vector_store %arg21[%c6, %c0_146, %c0_147], %508 {strides = array<i32>} : memref<8x4x3xf32, #tpu.memory_space<vmem>>, vector<1x4x3xf32>,
    %cst_148 = arith.constant dense<0.000000e+00> : vector<4x3xf32>
    %509 = tpu.matmul %466, %270, %cst_148 {dimension_numbers = #tpu.dot_dimension_numbers<[1], [0], [0], [1], [0, 0, 1, 1], [], []>} : vector<4x32xf32>, vector<32x3xf32>, vector<4x3xf32> -> vector<4x3xf32>
    %510 = vector.broadcast %271 : vector<1x3xf32> to vector<4x3xf32>
    %511 = arith.addf %509, %510 : vector<4x3xf32>
    %c7 = arith.constant 7 : index
    %c0_149 = arith.constant 0 : index
    %c0_150 = arith.constant 0 : index
    %512 = vector.load %arg21[%c7, %c0_149, %c0_150] : memref<8x4x3xf32, #tpu.memory_space<vmem>>, vector<1x4x3xf32>
    %513 = vector.shape_cast %512 : vector<1x4x3xf32> to vector<4x3xf32>
    %514 = vector.shape_cast %511 : vector<4x3xf32> to vector<1x4x3xf32>
    tpu.vector_store %arg21[%c7, %c0_149, %c0_150], %514 {strides = array<i32>} : memref<8x4x3xf32, #tpu.memory_space<vmem>>, vector<1x4x3xf32>,
    return
  }
}

</mosaic_0001>

<bundles_post_ra>
// kernel: generator_forward.1
= control target key start
LH: loop header
LB: loop body
LE: loop exit
PB: predicated region body
PF: predicated region fallthrough
CT: control target
= control target key end

     0   :  { %vm103_vm0 = vcmask 1042432   ;;  %vm90_vm1 = vcmask 23552   ;;  %v3643_v0 = vmov 0.0|0.0   ;;  %vm3644_vm2 = vmmov 0   ;;  %s3647_s28 = smov 64   ;;  %s3648_s29 = smov 32   ;;  %s4276_s3 = inlined_call_operand.vmem [shape: f32[32,128], index: 3, kind: input, shape index: {}]   ;;  %s4277_s2 = inlined_call_operand.vmem [shape: f32[3,128], index: 2, kind: input, shape index: {}]   ;;  %s4278_s0 = inlined_call_operand.vmem [shape: f32[32,3], index: 0, kind: input, shape index: {}]   ;;  %s4279_s4 = inlined_call_operand.vmem [shape: f32[1,128], index: 4, kind: input, shape index: {}]   ;;  %s4280_s5 = inlined_call_operand.vmem [shape: f32[32,64], index: 5, kind: input, shape index: {}]   ;;  %s4281_s9 = inlined_call_operand.vmem [shape: f32[64,24], index: 9, kind: input, shape index: {}]   ;;  %s4282_s6 = inlined_call_operand.vmem [shape: f32[1,64], index: 6, kind: input, shape index: {}]   ;;  %s4283_s7 = inlined_call_operand.vmem [shape: f32[1,64], index: 7, kind: input, shape index: {}]   ;;  %s4284_s8 = inlined_call_operand.vmem [shape: f32[1,64], index: 8, kind: input, shape index: {}]   ;;  %s4285_s15 = inlined_call_operand.vmem [shape: f32[24,128], index: 15, kind: input, shape index: {}]   ;;  %s4286_s16 = inlined_call_operand.vmem [shape: f32[8,128], index: 16, kind: input, shape index: {}]   ;;  %s4287_s1 = inlined_call_operand.vmem [shape: f32[4,8], index: 1, kind: input, shape index: {}]   ;;  %s4288_s10 = inlined_call_operand.vmem [shape: f32[1,24], index: 10, kind: input, shape index: {}]   ;;  %s4289_s11 = inlined_call_operand.vmem [shape: f32[1,24], index: 11, kind: input, shape index: {}]   ;;  %s4290_s12 = inlined_call_operand.vmem [shape: f32[1,24], index: 12, kind: input, shape index: {}]   ;;  %s4291_s13 = inlined_call_operand.vmem [shape: f32[3,128], index: 13, kind: input, shape index: {}]   ;;  %s4292_s14 = inlined_call_operand.vmem [shape: f32[1,128], index: 14, kind: input, shape index: {}]   ;;  %s4293_s17 = inlined_call_operand.vmem [shape: f32[32,128], index: 17, kind: input, shape index: {}]   ;;  %s4294_s18 = inlined_call_operand.vmem [shape: f32[1,128], index: 18, kind: input, shape index: {}]   ;;  %s4295_s19 = inlined_call_operand.vmem [shape: f32[32,3], index: 19, kind: input, shape index: {}]   ;;  %s4296_s20 = inlined_call_operand.vmem [shape: f32[1,3], index: 20, kind: input, shape index: {}]   ;;  %s4297_s21 = inlined_call_operand.vmem [shape: f32[8,4,3], index: 21, kind: output, shape index: {}]  }
   0x1   :  { %4302 = sst [smem:[#allocation2_spill]] %s4276_s3  ;;  %3378 = vmatprep.subr.bf16.mxu1 %v3643_v0  ;;  %v3645_v8 = vmov 0.0   ;;  %v68_v11 = vlaneseq  ;;  %v3646_v17 = vmov 1.0   ;;  %vm192_vm6 = vcmask 261120  }
   0x2   :  { %4303 = sst [smem:[#allocation3_spill]] %s4277_s2  ;;  %s4308_s26 = sld [smem:[#allocation2_spill]]  ;;  %3084 = vmatprep.mubr.msk.f32.mxu1 %vm3644_vm2, %v3645_v8  ;;  %vm1097_vm7 = vcmask 519168   ;;  %vm1152_vm8 = vcmask 523264   ;;  %vm1431_vm9 = vcmask 64512   ;;  %vm1226_vm10 = vcmask 191488  }
   0x3   :  { %4304 = sst [smem:[#allocation4_spill]] %s4278_s0  ;;  %s4309_s3 = sld [smem:[#allocation3_spill]]  ;;  %v69_v12 = vand.u32 127, %v68_v11  ;;  %vm1279_vm11 = vcmask 195584   ;;  %vm2329_vm12 = vcmask 19456  }
   0x4   :  { %4305 = sst [smem:[#allocation5_spill]] %s4279_s4 }
   0x5   :  { %4306 = sst [smem:[#allocation6_spill]] %s4280_s5  ;;  %s4311_s4 = sld [smem:[#allocation5_spill]]  ;;  %vm70_vm3 = vcmp.ge.s32.totalorder %v69_v12, 64  ;;  %vm71_vm4 = vcmp.lt.s32.totalorder %v69_v12, 96 }
   0x6   :  { %4307 = sst [smem:[#allocation7_spill]] %s4281_s9  ;;  %s4310_s9 = sld [smem:[#allocation4_spill]]  ;;  %vm72_vm5 = vmand %vm70_vm3, %vm71_vm4 }
   0x7   :  { %v3815_v18 = vsel %vm72_vm5, 2.0, %v3646_v17  ;;  %s4312_s2 = sld [smem:[#allocation6_spill]]  ;;  %s4313_s30 = sld [smem:[#allocation7_spill]] }
   0x8   :  { %v78_v1 = vld [vmem:[%s4308_s26] sm:$0xff]  ;;  %v79_v2 = vld [vmem:[%s4308_s26 + $0x8] sm:$0xff]  ;;  %v80_v7 = vld [vmem:[%s4308_s26 + $0x10] sm:$0xff] }
   0x9   :  { %v82_v3 = vld [vmem:[%s4309_s3] sm:$0x7]  ;;  %v3769_v4 = vpack.c.bf16 %v79_v2, %v78_v1  ;;  %v81_v9 = vld [vmem:[%s4308_s26 + $0x18] sm:$0xff] }
   0xa   :  { %3068 = vmatprep.subr.msk.mxu0 %vm103_vm0, %v82_v3  ;;  %v3790_v10 = vpack.c.bf16 %v81_v9, %v80_v7 }
   0xb   :  { %3069 = vmatpush3.msk.msra.mxu0 %vm103_vm0, %v82_v3  ;;  %3380 = vmatpush3.bf16.msra.mxu1 %v3769_v4  ;;  %v3812_v14 = vld [vmem:[%s4311_s4] ss:$0 sm:$0xff] }
   0xc   :  { %v74_v5 = vld [vmem:[%s4310_s9] sm:$0xff]  ;;  %v75_v6 = vld [vmem:[%s4310_s9 + $0x8] sm:$0xff]  ;;  %3381 = vmatprep.subr.bf16.mxu1 %v3643_v0  ;;  %3384 = vmatprep.subr.bf16.mxu0 %v3643_v0  ;;  %v76_v34 = vld [vmem:[%s4310_s9 + $0x10] sm:$0xff] }
   0xd   :  { %3070 = vmatprep.mubr.msk.f32.mxu0 %vm90_vm1, %v74_v5  ;;  %v3826_v35 = vld [vmem:[%s4310_s9 + $0x18] sm:$0xff] }
   0xe   :  { %3071 = vmatmul.mubr.msk.f32.vlgmr.msra.gmra.mrb[0].mxu0 %vm90_vm1, %v75_v6 }
   0xf   :  { %3386 = vmatpush3.bf16.msra.mxu0 %v3769_v4  ;;  %3383 = vmatpush3.bf16.msra.mxu1 %v3790_v10 }
  0x10   :  { %3387 = vmatprep.subr.bf16.mxu0 %v3643_v0  ;;  %3390 = vmatprep.subr.bf16.mxu1 %v3643_v0 }
  0x11   :  { %3073 = vmatprep.mubr.msk.f32.mxu0 %vm90_vm1, %v76_v34 }
  0x12   :  { %3085 = vmatmul.mubr.f32.vlgmr.msra.gmra.mrb[0].mxu1 %v3645_v8  ;;  %3074 = vmatmul.mubr.msk.f32.gmra.mrb[2].mxu0 %vm90_vm1, %v3826_v35 }
  0x13   :  { %3389 = vmatpush3.bf16.msra.mxu0 %v3790_v10  ;;  %3392 = vmatpush3.bf16.msra.mxu1 %v3769_v4 }
  0x14   :  { %3396 = vmatprep.subr.bf16.mxu0 %v3643_v0  ;;  %3106 = vmatprep.mubr.msk.f32.mxu1 %vm3644_vm2, %v3645_v8 }
  0x15   :  { %3393 = vmatprep.subr.bf16.mxu1 %v3643_v0  ;;  %3095 = vmatprep.mubr.msk.f32.mxu0 %vm3644_vm2, %v3645_v8 }
  0x17   :  { %3395 = vmatpush3.bf16.msra.mxu1 %v3790_v10 }
  0x18   :  { %3402 = vmatprep.subr.bf16.mxu1 %v3643_v0 }
  0xe1   :  { %v3807_v13 = vpop.f32.mrb[0].mxu0 }
  0xe2   :  { %v173_v15 = vpop.f32.mrb[1].mxu0  ;;  %v179_v62 = vadd.f32 %v3807_v13, %v3812_v14 }
  0xe3   :  { %v174_v16 = vadd.f32 %v3812_v14, %v173_v15 }
  0xe5   :  { %v262_v19 = vpop.f32.mrb[0].mxu1  ;;  %v3835_v39 = vpop.f32.mrb[2].mxu0  ;;  %v296_v42 = vrot.slane %v174_v16, 4 }
  0xe6   :  { %v263_v20 = vadd.f32 %v262_v19, %v174_v16  ;;  %v3086_v21 = vpop.f32.mrb[1].mxu1  ;;  %v3837_v40 = vpop.f32.mrb[3].mxu0 }
  0xe8   :  { %v266_v22 = vmul.f32 %v263_v20, %v3815_v18 }
  0xea   :  { %v2850_v23 = vmul.f32 -1.442695, %v266_v22 }
  0xec   :  { %3543 = vpow2.f32 %v2850_v23 }
  0xf6   :  { %v3544_v24 = vpop.eup %3543 }
  0xf7   :  { %v270_v25 = vadd.f32 1.0, %v3544_v24  ;;  %v501_v24 = vrot.slane %v179_v62, 4 }
  0xf9   :  { %3545 = vrcp.f32 %v270_v25 }
 0x103   :  { %v3546_v26 = vpop.eup %3545 }
 0x104   :  { %v273_v27 = vmul.f32 2.0, %v3546_v26  ;;  %v275_v31 = vmul.f32 0.0, %v3546_v26 }
 0x106   :  { %v2851_v28 = vadd.f32 -1.0, %v273_v27 }
 0x108   :  { %277 = vrot.lane.b32.xlu0 %v2851_v28, %s3647_s28 }
 0x17a   :  { %v278_v29 = vpop.permute.xlu0 %277 }
 0x17b   :  { %v280_v30 = vmul.f32 %v3546_v26, %v278_v29 }
 0x17d   :  { %282 = vrot.lane.b32.xlu0 %v280_v30, %s3648_s29 }
 0x1ef   :  { %v283_v32 = vpop.permute.xlu0 %282 }
 0x1f0   :  { %v285_v33 = vadd.f32 %v283_v32, %v275_v31 }
 0x1f2   :  { %3547 = vtanh.f32 %v285_v33 }
 0x1fc   :  { %v3548_v36 = vpop.eup %3547 }
 0x1fd   :  { %288 = vrot.lane.b32.xlu1 %v3548_v36, %s3647_s28 }
 0x26f   :  { %v289_v37 = vpop.permute.xlu1 %288 }
 0x270   :  { %v291_v38 = vmul.f32 %v3546_v26, %v289_v37 }
 0x272   :  { %293 = vrot.lane.b32.xlu1 %v291_v38, %s3648_s29 }
 0x2e4   :  { %v294_v41 = vpop.permute.xlu1 %293 }
 0x2e5   :  { %3096 = vmatmul.mubr.msk.f32.vlgmr.msra.gmra.mrb[4].mxu0 %vm192_vm6, %v294_v41 }
 0x2e6   :  { %3398 = vmatpush3.bf16.msra.mxu0 %v3769_v4  ;;  %3117 = vmatprep.mubr.msk.f32.mxu0 %vm3644_vm2, %v3645_v8 }
 0x2e7   :  { %3399 = vmatprep.subr.bf16.mxu0 %v3643_v0 }
 0x2ea   :  { %3401 = vmatpush3.bf16.msra.mxu0 %v3790_v10 }
 0x2eb   :  { %3408 = vmatprep.subr.bf16.mxu0 %v3643_v0 }
 0x3b8   :  { %v366_v43 = vpop.f32.mrb[4].mxu0 }
 0x3b9   :  { %v367_v44 = vadd.f32 %v366_v43, %v296_v42  ;;  %v3097_v45 = vpop.f32.mrb[5].mxu0 }
 0x3bb   :  { %v370_v46 = vmul.f32 %v367_v44, %v3815_v18 }
 0x3bd   :  { %v2853_v47 = vmul.f32 -1.442695, %v370_v46 }
 0x3bf   :  { %3549 = vpow2.f32 %v2853_v47  ;;  %v184_v47 = vadd.f32 %v3812_v14, %v3837_v40 }
 0x3c9   :  { %v3550_v48 = vpop.eup %3549 }
 0x3ca   :  { %v374_v49 = vadd.f32 1.0, %v3550_v48 }
 0x3cc   :  { %3551 = vrcp.f32 %v374_v49 }
 0x3d6   :  { %v3552_v50 = vpop.eup %3551 }
 0x3d7   :  { %v377_v51 = vmul.f32 2.0, %v3552_v50  ;;  %v379_v55 = vmul.f32 %v3552_v50, %v285_v33 }
 0x3d9   :  { %v2854_v52 = vadd.f32 -1.0, %v377_v51 }
 0x3db   :  { %381 = vrot.lane.b32.xlu0 %v2854_v52, %s3647_s28 }
 0x44d   :  { %v382_v53 = vpop.permute.xlu0 %381 }
 0x44e   :  { %v384_v54 = vmul.f32 %v3552_v50, %v382_v53 }
 0x450   :  { %386 = vrot.lane.b32.xlu1 %v384_v54, %s3648_s29 }
 0x4c2   :  { %v387_v56 = vpop.permute.xlu1 %386 }
 0x4c3   :  { %v389_v57 = vadd.f32 %v387_v56, %v379_v55 }
 0x4c5   :  { %3553 = vtanh.f32 %v389_v57 }
 0x4cf   :  { %v3554_v58 = vpop.eup %3553 }
 0x4d0   :  { %392 = vrot.lane.b32.xlu0 %v3554_v58, %s3647_s28 }
 0x542   :  { %v393_v59 = vpop.permute.xlu0 %392 }
 0x543   :  { %v395_v60 = vmul.f32 %v3552_v50, %v393_v59 }
 0x545   :  { %397 = vrot.lane.b32.xlu1 %v395_v60, %s3648_s29 }
 0x5b7   :  { %v398_v61 = vpop.permute.xlu1 %397 }
 0x5b8   :  { %3107 = vmatmul.mubr.msk.f32.vlgmr.msra.gmra.mrb[2].mxu1 %vm192_vm6, %v398_v61 }
 0x5b9   :  { %3404 = vmatpush3.bf16.msra.mxu1 %v3769_v4  ;;  %3128 = vmatprep.mubr.msk.f32.mxu1 %vm3644_vm2, %v3645_v8 }
 0x5ba   :  { %3405 = vmatprep.subr.bf16.mxu1 %v3643_v0 }
 0x5bd   :  { %3407 = vmatpush3.bf16.msra.mxu1 %v3790_v10 }
 0x5be   :  { %3414 = vmatprep.subr.bf16.mxu1 %v3643_v0 }
 0x68b   :  { %v467_v63 = vpop.f32.mrb[2].mxu1 }
 0x68c   :  { %v468_v1 = vadd.f32 %v467_v63, %v179_v62  ;;  %v3108_v2 = vpop.f32.mrb[3].mxu1 }
 0x68e   :  { %v471_v3 = vmul.f32 %v468_v1, %v3815_v18 }
 0x690   :  { %v2856_v5 = vmul.f32 -1.442695, %v471_v3  ;;  %v706_v3 = vrot.slane %v184_v47, 4 }
 0x692   :  { %3555 = vpow2.f32 %v2856_v5 }
 0x69c   :  { %v3556_v6 = vpop.eup %3555 }
 0x69d   :  { %v475_v7 = vadd.f32 1.0, %v3556_v6 }
 0x69f   :  { %3557 = vrcp.f32 %v475_v7 }
 0x6a9   :  { %v3558_v9 = vpop.eup %3557 }
 0x6aa   :  { %v478_v11 = vmul.f32 2.0, %v3558_v9  ;;  %v480_v13 = vmul.f32 %v3558_v9, %v389_v57 }
 0x6ac   :  { %v2857_v12 = vadd.f32 -1.0, %v478_v11 }
 0x6ae   :  { %482 = vrot.lane.b32.xlu0 %v2857_v12, %s3647_s28 }
 0x720   :  { %v483_v15 = vpop.permute.xlu0 %482 }
 0x721   :  { %v485_v16 = vmul.f32 %v3558_v9, %v483_v15 }
 0x723   :  { %487 = vrot.lane.b32.xlu1 %v485_v16, %s3648_s29 }
 0x795   :  { %v488_v17 = vpop.permute.xlu1 %487 }
 0x796   :  { %v490_v19 = vadd.f32 %v488_v17, %v480_v13 }
 0x798   :  { %3559 = vtanh.f32 %v490_v19 }
 0x7a2   :  { %v3560_v20 = vpop.eup %3559 }
 0x7a3   :  { %493 = vrot.lane.b32.xlu0 %v3560_v20, %s3647_s28 }
 0x815   :  { %v494_v21 = vpop.permute.xlu0 %493 }
 0x816   :  { %v496_v22 = vmul.f32 %v3558_v9, %v494_v21 }
 0x818   :  { %498 = vrot.lane.b32.xlu1 %v496_v22, %s3648_s29 }
 0x88a   :  { %v499_v23 = vpop.permute.xlu1 %498 }
 0x88b   :  { %3118 = vmatmul.mubr.msk.f32.vlgmr.msra.gmra.mrb[6].mxu0 %vm192_vm6, %v499_v23 }
 0x88c   :  { %3410 = vmatpush3.bf16.msra.mxu0 %v3769_v4  ;;  %3139 = vmatprep.mubr.msk.f32.mxu0 %vm3644_vm2, %v3645_v8 }
 0x88d   :  { %3411 = vmatprep.subr.bf16.mxu0 %v3643_v0 }
 0x890   :  { %3413 = vmatpush3.bf16.msra.mxu0 %v3790_v10 }
 0x891   :  { %3420 = vmatprep.subr.bf16.mxu0 %v3643_v0 }
 0x95e   :  { %v571_v25 = vpop.f32.mrb[6].mxu0 }
 0x95f   :  { %v572_v26 = vadd.f32 %v571_v25, %v501_v24  ;;  %v3119_v27 = vpop.f32.mrb[7].mxu0 }
 0x961   :  { %v575_v28 = vmul.f32 %v572_v26, %v3815_v18  ;;  %v189_v26 = vadd.f32 %v3835_v39, %v3812_v14 }
 0x963   :  { %v2859_v29 = vmul.f32 -1.442695, %v575_v28 }
 0x965   :  { %3561 = vpow2.f32 %v2859_v29 }
 0x96f   :  { %v3562_v30 = vpop.eup %3561 }
 0x970   :  { %v579_v31 = vadd.f32 1.0, %v3562_v30 }
 0x972   :  { %3563 = vrcp.f32 %v579_v31 }
 0x97c   :  { %v3564_v32 = vpop.eup %3563 }
 0x97d   :  { %v582_v33 = vmul.f32 2.0, %v3564_v32  ;;  %v584_v38 = vmul.f32 %v3564_v32, %v490_v19 }
 0x97f   :  { %v2860_v34 = vadd.f32 -1.0, %v582_v33 }
 0x981   :  { %586 = vrot.lane.b32.xlu0 %v2860_v34, %s3647_s28 }
 0x9f3   :  { %v587_v36 = vpop.permute.xlu0 %586 }
 0x9f4   :  { %v589_v37 = vmul.f32 %v3564_v32, %v587_v36 }
 0x9f6   :  { %591 = vrot.lane.b32.xlu1 %v589_v37, %s3648_s29 }
 0xa68   :  { %v592_v41 = vpop.permute.xlu1 %591 }
 0xa69   :  { %v594_v42 = vadd.f32 %v592_v41, %v584_v38 }
 0xa6b   :  { %3565 = vtanh.f32 %v594_v42 }
 0xa75   :  { %v3566_v43 = vpop.eup %3565 }
 0xa76   :  { %597 = vrot.lane.b32.xlu0 %v3566_v43, %s3647_s28 }
 0xae8   :  { %v598_v44 = vpop.permute.xlu0 %597 }
 0xae9   :  { %v600_v45 = vmul.f32 %v3564_v32, %v598_v44 }
 0xaeb   :  { %602 = vrot.lane.b32.xlu1 %v600_v45, %s3648_s29 }
 0xb5d   :  { %v603_v46 = vpop.permute.xlu1 %602 }
 0xb5e   :  { %3129 = vmatmul.mubr.msk.f32.vlgmr.msra.gmra.mrb[4].mxu1 %vm192_vm6, %v603_v46 }
 0xb5f   :  { %3416 = vmatpush3.bf16.msra.mxu1 %v3769_v4  ;;  %3150 = vmatprep.mubr.msk.f32.mxu1 %vm3644_vm2, %v3645_v8 }
 0xb60   :  { %3417 = vmatprep.subr.bf16.mxu1 %v3643_v0 }
 0xb63   :  { %3419 = vmatpush3.bf16.msra.mxu1 %v3790_v10 }
 0xb64   :  { %3426 = vmatprep.subr.bf16.mxu1 %v3643_v0 }
 0xc31   :  { %v672_v48 = vpop.f32.mrb[4].mxu1 }
 0xc32   :  { %v673_v49 = vadd.f32 %v672_v48, %v184_v47  ;;  %v3130_v50 = vpop.f32.mrb[5].mxu1  ;;  %v911_v47 = vrot.slane %v189_v26, 4 }
 0xc34   :  { %v676_v51 = vmul.f32 %v673_v49, %v3815_v18 }
 0xc36   :  { %v2862_v52 = vmul.f32 -1.442695, %v676_v51 }
 0xc38   :  { %3567 = vpow2.f32 %v2862_v52 }
 0xc42   :  { %v3568_v53 = vpop.eup %3567 }
 0xc43   :  { %v680_v54 = vadd.f32 1.0, %v3568_v53 }
 0xc45   :  { %3569 = vrcp.f32 %v680_v54 }
 0xc4f   :  { %v3570_v55 = vpop.eup %3569 }
 0xc50   :  { %v683_v56 = vmul.f32 2.0, %v3570_v55  ;;  %v685_v40 = vmul.f32 %v3570_v55, %v594_v42 }
 0xc52   :  { %v2863_v57 = vadd.f32 -1.0, %v683_v56 }
 0xc54   :  { %687 = vrot.lane.b32.xlu0 %v2863_v57, %s3647_s28 }
 0xcc6   :  { %v688_v58 = vpop.permute.xlu0 %687 }
 0xcc7   :  { %v690_v59 = vmul.f32 %v3570_v55, %v688_v58 }
 0xcc9   :  { %692 = vrot.lane.b32.xlu1 %v690_v59, %s3648_s29 }
 0xd3b   :  { %v693_v60 = vpop.permute.xlu1 %692 }
 0xd3c   :  { %v695_v61 = vadd.f32 %v693_v60, %v685_v40 }
 0xd3e   :  { %3571 = vtanh.f32 %v695_v61 }
 0xd48   :  { %v3572_v62 = vpop.eup %3571 }
 0xd49   :  { %698 = vrot.lane.b32.xlu0 %v3572_v62, %s3647_s28  ;;  %v1011_v62 = vld [vmem:[%s4312_s2] sm:$0xff] }
 0xdbb   :  { %v699_v63 = vpop.permute.xlu0 %698 }
 0xdbc   :  { %v701_v1 = vmul.f32 %v3570_v55, %v699_v63  ;;  %v1012_v63 = vld [vmem:[%s4312_s2 + $0x8] sm:$0xff] }
 0xdbe   :  { %703 = vrot.lane.b32.xlu1 %v701_v1, %s3648_s29  ;;  %v1013_v1 = vld [vmem:[%s4312_s2 + $0x10] sm:$0xff] }
 0xe30   :  { %v704_v2 = vpop.permute.xlu1 %703 }
 0xe31   :  { %3140 = vmatmul.mubr.msk.f32.vlgmr.msra.gmra.mrb[8].mxu0 %vm192_vm6, %v704_v2  ;;  %v3427_v2 = vpack.c.bf16 %v1012_v63, %v1011_v62 }
 0xe32   :  { %3422 = vmatpush3.bf16.msra.mxu0 %v3769_v4  ;;  %3161 = vmatprep.mubr.msk.f32.mxu0 %vm3644_vm2, %v3645_v8 }
 0xe33   :  { %3423 = vmatprep.subr.bf16.mxu0 %v3643_v0 }
 0xe36   :  { %3425 = vmatpush3.bf16.msra.mxu0 %v3790_v10 }
 0xe37   :  { %3432 = vmatprep.subr.bf16.mxu0 %v3643_v0 }
 0xf04   :  { %v776_v5 = vpop.f32.mrb[8].mxu0 }
 0xf05   :  { %v777_v6 = vadd.f32 %v776_v5, %v706_v3  ;;  %v3141_v7 = vpop.f32.mrb[9].mxu0  ;;  %v1014_v3 = vld [vmem:[%s4312_s2 + $0x18] sm:$0xff] }
 0xf06   :  { %v3430_v5 = vpack.c.bf16 %v1014_v3, %v1013_v1 }
 0xf07   :  { %v780_v9 = vmul.f32 %v777_v6, %v3815_v18 }
 0xf09   :  { %v2865_v11 = vmul.f32 -1.442695, %v780_v9 }
 0xf0b   :  { %3573 = vpow2.f32 %v2865_v11 }
 0xf15   :  { %v3574_v12 = vpop.eup %3573 }
 0xf16   :  { %v784_v15 = vadd.f32 1.0, %v3574_v12  ;;  %v1137_v12 = vld [vmem:[%s4313_s30] sm:$0xff] }
 0xf18   :  { %3575 = vrcp.f32 %v784_v15  ;;  %v1138_v15 = vld [vmem:[%s4313_s30 + $0x8] sm:$0xff] }
 0xf22   :  { %v3576_v4 = vpop.eup %3575 }
 0xf23   :  { %v787_v16 = vmul.f32 2.0, %v3576_v4  ;;  %v789_v19 = vmul.f32 %v3576_v4, %v695_v61 }
 0xf25   :  { %v2866_v13 = vadd.f32 -1.0, %v787_v16  ;;  %v1139_v16 = vld [vmem:[%s4313_s30 + $0x10] sm:$0xff] }
 0xf27   :  { %791 = vrot.lane.b32.xlu0 %v2866_v13, %s3647_s28  ;;  %v1140_v13 = vld [vmem:[%s4313_s30 + $0x18] sm:$0xff] }
 0xf99   :  { %v792_v17 = vpop.permute.xlu0 %791 }
 0xf9a   :  { %v794_v10 = vmul.f32 %v3576_v4, %v792_v17  ;;  %v3436_v17 = vpack.c.bf16 %v1140_v13, %v1139_v16 }
 0xf9c   :  { %796 = vrot.lane.b32.xlu1 %v794_v10, %s3648_s29  ;;  %v1141_v10 = vld [vmem:[%s4313_s30 + $0x20] sm:$0xff] }
0x100e   :  { %v797_v20 = vpop.permute.xlu1 %796 }
0x100f   :  { %v799_v21 = vadd.f32 %v797_v20, %v789_v19  ;;  %v1142_v19 = vld [vmem:[%s4313_s30 + $0x28] sm:$0xff] }
0x1010   :  { %v3439_v20 = vpack.c.bf16 %v1142_v19, %v1141_v10 }
0x1011   :  { %3577 = vtanh.f32 %v799_v21 }
0x101b   :  { %v3578_v22 = vpop.eup %3577 }
0x101c   :  { %802 = vrot.lane.b32.xlu0 %v3578_v22, %s3647_s28  ;;  %v1144_v22 = vld [vmem:[%s4313_s30 + $0x38] sm:$0xff] }
0x108e   :  { %v803_v23 = vpop.permute.xlu0 %802 }
0x108f   :  { %v805_v24 = vmul.f32 %v3576_v4, %v803_v23  ;;  %v3433_v4 = vpack.c.bf16 %v1138_v15, %v1137_v12 }
0x1091   :  { %807 = vrot.lane.b32.xlu1 %v805_v24, %s3648_s29  ;;  %v2873_v24 = vld [vmem:[%s4282_s6] ss:$0 sm:$0xff] }
0x1103   :  { %v808_v25 = vpop.permute.xlu1 %807 }
0x1104   :  { %3151 = vmatmul.mubr.msk.f32.vlgmr.msra.gmra.mrb[6].mxu1 %vm192_vm6, %v808_v25 }
0x1105   :  { %3172 = vmatprep.mubr.msk.f32.mxu1 %vm3644_vm2, %v3645_v8  ;;  %3428 = vmatpush3.bf16.msra.mxu1 %v3427_v2 }
0x1106   :  { %3429 = vmatprep.subr.bf16.mxu1 %v3643_v0 }
0x1109   :  { %3431 = vmatpush3.bf16.msra.mxu1 %v3430_v5 }
0x110a   :  { %3444 = vmatprep.subr.bf16.mxu1 %v3643_v0 }
0x11d7   :  { %v877_v27 = vpop.f32.mrb[6].mxu1 }
0x11d8   :  { %v878_v28 = vadd.f32 %v877_v27, %v189_v26  ;;  %v3152_v29 = vpop.f32.mrb[7].mxu1 }
0x11da   :  { %v881_v30 = vmul.f32 %v878_v28, %v3815_v18 }
0x11dc   :  { %v2868_v31 = vmul.f32 -1.442695, %v881_v30 }
0x11de   :  { %3579 = vpow2.f32 %v2868_v31 }
0x11e8   :  { %v3580_v32 = vpop.eup %3579 }
0x11e9   :  { %v885_v33 = vadd.f32 1.0, %v3580_v32 }
0x11eb   :  { %3581 = vrcp.f32 %v885_v33 }
0x11f5   :  { %v3582_v34 = vpop.eup %3581 }
0x11f6   :  { %v888_v36 = vmul.f32 2.0, %v3582_v34  ;;  %v890_v14 = vmul.f32 %v3582_v34, %v799_v21  ;;  %v1143_v21 = vld [vmem:[%s4313_s30 + $0x30] sm:$0xff] }
0x11f7   :  { %v3442_v23 = vpack.c.bf16 %v1144_v22, %v1143_v21 }
0x11f8   :  { %v2869_v37 = vadd.f32 -1.0, %v888_v36 }
0x11fa   :  { %892 = vrot.lane.b32.xlu0 %v2869_v37, %s3647_s28 }
0x126c   :  { %v893_v38 = vpop.permute.xlu0 %892 }
0x126d   :  { %v895_v41 = vmul.f32 %v3582_v34, %v893_v38 }
0x126f   :  { %897 = vrot.lane.b32.xlu1 %v895_v41, %s3648_s29 }
0x12e1   :  { %v898_v39 = vpop.permute.xlu1 %897 }
0x12e2   :  { %v900_v42 = vadd.f32 %v898_v39, %v890_v14 }
0x12e4   :  { %3583 = vtanh.f32 %v900_v42 }
0x12ee   :  { %v3584_v43 = vpop.eup %3583 }
0x12ef   :  { %903 = vrot.lane.b32.xlu0 %v3584_v43, %s3647_s28 }
0x1361   :  { %v904_v44 = vpop.permute.xlu0 %903 }
0x1362   :  { %v906_v45 = vmul.f32 %v3582_v34, %v904_v44 }
0x1364   :  { %908 = vrot.lane.b32.xlu1 %v906_v45, %s3648_s29 }
0x13d6   :  { %v909_v46 = vpop.permute.xlu1 %908 }
0x13d7   :  { %3162 = vmatmul.mubr.msk.f32.vlgmr.msra.gmra.mrb[10].mxu0 %vm192_vm6, %v909_v46 }
0x13d8   :  { %3191 = vmatprep.mubr.msk.f32.mxu0 %vm3644_vm2, %v3645_v8  ;;  %3434 = vmatpush3.bf16.msra.mxu0 %v3433_v4 }
0x13d9   :  { %3435 = vmatprep.subr.bf16.mxu0 %v3643_v0 }
0x13dc   :  { %3437 = vmatpush3.bf16.msra.mxu0 %v3436_v17 }
0x13dd   :  { %3438 = vmatprep.subr.bf16.mxu0 %v3643_v0 }
0x13e0   :  { %3440 = vmatpush3.bf16.msra.mxu0 %v3439_v20 }
0x13e1   :  { %3441 = vmatprep.subr.bf16.mxu0 %v3643_v0 }
0x13e4   :  { %3443 = vmatpush3.bf16.msra.mxu0 %v3442_v23 }
0x13e5   :  { %3208 = vmatprep.subr.mxu0 %v3645_v8 }
0x14aa   :  { %v981_v48 = vpop.f32.mrb[10].mxu0 }
0x14ab   :  { %v982_v49 = vadd.f32 %v981_v48, %v911_v47  ;;  %v3163_v50 = vpop.f32.mrb[11].mxu0 }
0x14ad   :  { %v985_v51 = vmul.f32 %v982_v49, %v3815_v18  ;;  %v2875_v49 = vld [vmem:[%s4283_s7] ss:$0 sm:$0xff] }
0x14af   :  { %v2871_v52 = vmul.f32 -1.442695, %v985_v51  ;;  %v2876_v51 = vld [vmem:[%s4284_s8] ss:$0 sm:$0xff] }
0x14b1   :  { %3585 = vpow2.f32 %v2871_v52 }
0x14bb   :  { %v3586_v53 = vpop.eup %3585 }
0x14bc   :  { %v989_v54 = vadd.f32 1.0, %v3586_v53 }
0x14be   :  { %3587 = vrcp.f32 %v989_v54 }
0x14c8   :  { %v3588_v55 = vpop.eup %3587 }
0x14c9   :  { %v992_v56 = vmul.f32 2.0, %v3588_v55  ;;  %v994_v40 = vmul.f32 %v3588_v55, %v900_v42 }
0x14cb   :  { %v2872_v57 = vadd.f32 -1.0, %v992_v56  ;;  %v1277_v56 = vld [vmem:[%s4285_s15 + $0x8] sm:$0xff] }
0x14cd   :  { %996 = vrot.lane.b32.xlu0 %v2872_v57, %s3647_s28 }
0x153f   :  { %v997_v58 = vpop.permute.xlu0 %996 }
0x1540   :  { %v999_v59 = vmul.f32 %v3588_v55, %v997_v58  ;;  %v1278_v58 = vld [vmem:[%s4285_s15 + $0x10] sm:$0xff] }
0x1542   :  { %1001 = vrot.lane.b32.xlu1 %v999_v59, %s3648_s29  ;;  %v1430_v59 = vld [vmem:[%s4286_s16] sm:$0xff] }
0x15b4   :  { %v1002_v60 = vpop.permute.xlu1 %1001 }
0x15b5   :  { %v1004_v61 = vadd.f32 %v1002_v60, %v994_v40  ;;  %v1429_v40 = vld [vmem:[%s4287_s1] sm:$0xf] }
0x15b6   :  { %v2877_v60 = vld [vmem:[%s4288_s10] ss:$0 sm:$0xff] }
0x15b7   :  { %3589 = vtanh.f32 %v1004_v61 }
0x15c1   :  { %v3590_v6 = vpop.eup %3589 }
0x15c2   :  { %1007 = vrot.lane.b32.xlu0 %v3590_v6, %s3647_s28 }
0x1634   :  { %v1008_v7 = vpop.permute.xlu0 %1007 }
0x1635   :  { %v1010_v9 = vmul.f32 %v3588_v55, %v1008_v7  ;;  %v1276_v55 = vld [vmem:[%s4285_s15] sm:$0xff] }
0x1636   :  { %v3445_v57 = vpack.c.bf16 %v1277_v56, %v1276_v55  ;;  %v1266_v55 = vld [vmem:[%s4293_s17 + $0x8] sm:$0xff]  ;;  %v1267_v56 = vld [vmem:[%s4293_s17 + $0x10] sm:$0xff] }
0x1637   :  { %1023 = vrot.lane.b32.xlu1 %v1010_v9, %s3648_s29 }
0x16a9   :  { %v1024_v11 = vpop.permute.xlu1 %1023 }
0x16aa   :  { %3173 = vmatmul.mubr.msk.f32.vlgmr.msra.gmra.mrb[8].mxu1 %vm192_vm6, %v1024_v11 }
0x16ab   :  { %3200 = vmatprep.mubr.msk.f32.mxu1 %vm3644_vm2, %v3645_v8  ;;  %3446 = vmatpush3.bf16.msra.mxu1 %v3445_v57 }
0x16ac   :  { %3198 = vmatprep.subr.mxu1 %v3645_v8 }
0x16af   :  { %3199 = vmatpush3.msra.mxu1 %v1278_v58  ;;  %v1268_v58 = vld [vmem:[%s4293_s17 + $0x18] sm:$0xff] }
0x16b0   :  { %3203 = vmatprep.subr.mxu1 %v3645_v8 }
0x177d   :  { %v1093_v25 = vpop.f32.mrb[8].mxu1 }
0x177e   :  { %v1094_v26 = vadd.f32 %v2873_v24, %v1093_v25  ;;  %v3174_v27 = vpop.f32.mrb[9].mxu1  ;;  %v2879_v24 = vld [vmem:[%s4289_s11] ss:$0 sm:$0xff] }
0x1780   :  { %v1098_v28 = vsel %vm1097_vm7, %v1094_v26, 0.0 }
0x1781   :  { %v1099_v29 = vrot.slane %v1098_v28, 4 }
0x1783   :  { %v1100_v30 = vadd.f32 %v1099_v29, %v1098_v28 }
0x1785   :  { %v1101_v31 = vrot.slane %v1100_v30, 2 }
0x1787   :  { %v1102_v32 = vadd.f32 %v1101_v31, %v1100_v30  ;;  %v1275_v30 = vld [vmem:[%s4291_s13] sm:$0x7]  ;;  %v1353_v31 = vrot.slane %v3826_v35, 4 }
0x1789   :  { %v1103_v33 = vrot.slane %v1102_v32, 1 }
0x178b   :  { %v1104_v34 = vadd.f32 %v1103_v33, %v1102_v32 }
0x178d   :  { %v1106_v36 = vmul.f32 0.25, %v1104_v34 }
0x178f   :  { %v1107_v37 = vsub.f32 %v1094_v26, %v1106_v36  ;;  %v2880_v26 = vld [vmem:[%s4290_s12] ss:$0 sm:$0xff] }
0x1791   :  { %v1108_v38 = vmul.f32 %v1107_v37, %v1107_v37 }
0x1793   :  { %v1109_v41 = vsel %vm1097_vm7, %v1108_v38, 0.0 }
0x1794   :  { %v1110_v14 = vrot.slane %v1109_v41, 4 }
0x1796   :  { %v1111_v39 = vadd.f32 %v1110_v14, %v1109_v41  ;;  %v2885_v41 = vld [vmem:[%s4292_s14] ss:$0 sm:$0xff] }
0x1798   :  { %v1112_v42 = vrot.slane %v1111_v39, 2 }
0x179a   :  { %v1113_v43 = vadd.f32 %v1112_v42, %v1111_v39 }
0x179c   :  { %v1114_v44 = vrot.slane %v1113_v43, 1 }
0x179e   :  { %v1115_v45 = vadd.f32 %v1114_v44, %v1113_v43 }
0x17a0   :  { %v1116_v46 = vmul.f32 0.25, %v1115_v45 }
0x17a2   :  { %v1117_v47 = vadd.f32 1e-05, %v1116_v46 }
0x17a4   :  { %3591 = vrsqrt.f32 %v1117_v47 }
0x17ae   :  { %v3592_v48 = vpop.eup %3591 }
0x17af   :  { %v1119_v50 = vmul.f32 %v3592_v48, %v1107_v37 }
0x17b1   :  { %v1127_v52 = vmul.f32 %v2875_v49, %v1119_v50 }
0x17b3   :  { %v1135_v53 = vadd.f32 %v2876_v51, %v1127_v52 }
0x17b5   :  { %v1136_v54 = vmax.f32 %v1135_v53, 0.0 }
0x17b7   :  { %3192 = vmatmul.mubr.msk.f32.vlgmr.msra.gmra.mrb[12].mxu0 %vm1152_vm8, %v1136_v54  ;;  %v1265_v54 = vld [vmem:[%s4293_s17] sm:$0xff] }
0x17b8   :  { %3210 = vmatprep.mubr.msk.f32.mxu0 %vm3644_vm2, %v3645_v8  ;;  %3209 = vmatpush3.msra.mxu0 %v1430_v59  ;;  %v4032_v57 = vpack.c.bf16 %v1266_v55, %v1265_v54  ;;  %v4038_v59 = vpack.c.bf16 %v1268_v58, %v1267_v56 }
0x17b9   :  { %3453 = vmatprep.subr.bf16.mxu0 %v3643_v0 }
0x17bb   :  { %3211 = vmatmul.mubr.msk.f32.vlgmr.msra.gmra.mrb[14].mxu0 %vm1431_vm9, %v1429_v40 }
0x17bc   :  { %3232 = vmatprep.mubr.msk.f32.mxu0 %vm3644_vm2, %v3645_v8  ;;  %3455 = vmatpush3.bf16.msra.mxu0 %v4032_v57 }
0x17bd   :  { %3456 = vmatprep.subr.bf16.mxu0 %v3643_v0 }
0x17c0   :  { %3458 = vmatpush3.bf16.msra.mxu0 %v4038_v59 }
0x17c1   :  { %3465 = vmatprep.subr.bf16.mxu0 %v3643_v0 }
0x188a   :  { %v1222_v61 = vpop.f32.mrb[12].mxu0 }
0x188b   :  { %v1223_v62 = vadd.f32 %v2877_v60, %v1222_v61  ;;  %v3193_v63 = vpop.f32.mrb[13].mxu0 }
0x188c   :  { %v4062_v63 = vld [vmem:[%s4294_s18] ss:$0 sm:$0xff] }
0x188d   :  { %v1227_v1 = vsel %vm1226_vm10, %v1223_v62, 0.0 }
0x188e   :  { %v1228_v2 = vrot.slane %v1227_v1, 4  ;;  %v1501_v32 = vpop.f32.mrb[14].mxu0 }
0x188f   :  { %v3212_v33 = vpop.f32.mrb[15].mxu0 }
0x1890   :  { %v1229_v3 = vadd.f32 %v1228_v2, %v1227_v1 }
0x1892   :  { %v1230_v5 = vrot.slane %v1229_v3, 2 }
0x1894   :  { %v1231_v6 = vadd.f32 %v1230_v5, %v1229_v3 }
0x1896   :  { %v1232_v7 = vrot.slane %v1231_v6, 1 }
0x1898   :  { %v1233_v9 = vadd.f32 %v1232_v7, %v1231_v6 }
0x189a   :  { %v1234_v11 = vmul.f32 0.25, %v1233_v9 }
0x189c   :  { %v1235_v12 = vsub.f32 %v1223_v62, %v1234_v11 }
0x189e   :  { %v1236_v15 = vmul.f32 %v1235_v12, %v1235_v12 }
0x18a0   :  { %v1237_v4 = vsel %vm1226_vm10, %v1236_v15, 0.0 }
0x18a1   :  { %v1238_v16 = vrot.slane %v1237_v4, 4 }
0x18a3   :  { %v1239_v13 = vadd.f32 %v1238_v16, %v1237_v4 }
0x18a5   :  { %v1240_v17 = vrot.slane %v1239_v13, 2 }
0x18a7   :  { %v1241_v10 = vadd.f32 %v1240_v17, %v1239_v13 }
0x18a9   :  { %v1242_v19 = vrot.slane %v1241_v10, 1 }
0x18ab   :  { %v1243_v20 = vadd.f32 %v1242_v19, %v1241_v10 }
0x18ad   :  { %v1244_v21 = vmul.f32 0.25, %v1243_v20 }
0x18af   :  { %v1245_v22 = vadd.f32 1e-05, %v1244_v21 }
0x18b1   :  { %3593 = vrsqrt.f32 %v1245_v22 }
0x18bb   :  { %v3594_v23 = vpop.eup %3593 }
0x18bc   :  { %v1247_v25 = vmul.f32 %v3594_v23, %v1235_v12 }
0x18be   :  { %v1255_v27 = vmul.f32 %v2879_v24, %v1247_v25 }
0x18c0   :  { %v1263_v28 = vadd.f32 %v2880_v26, %v1255_v27 }
0x18c2   :  { %v1264_v29 = vmax.f32 %v1263_v28, 0.0 }
0x18c4   :  { %3201 = vmatmul.mubr.msk.f32.vlgmr.msra.gmra.mrb[10].mxu1 %vm1279_vm11, %v1264_v29 }
0x18c5   :  { %3204 = vmatpush3.msk.msra.mxu1 %vm103_vm0, %v1275_v30  ;;  %3205 = vmatprep.mubr.msk.f32.mxu1 %vm3644_vm2, %v3645_v8 }
0x18c6   :  { %3447 = vmatprep.subr.bf16.mxu1 %v3643_v0 }
0x18c8   :  { %3206 = vmatmul.mubr.msk.f32.vlgmr.msra.gmra.mrb[12].mxu1 %vm90_vm1, %v1353_v31 }
0x18c9   :  { %3221 = vmatprep.mubr.msk.f32.mxu1 %vm3644_vm2, %v3645_v8  ;;  %3449 = vmatpush3.bf16.msra.mxu1 %v4032_v57 }
0x18ca   :  { %3450 = vmatprep.subr.bf16.mxu1 %v3643_v0 }
0x18cd   :  { %3452 = vmatpush3.bf16.msra.mxu1 %v4038_v59 }
0x18ce   :  { %3459 = vmatprep.subr.bf16.mxu1 %v3643_v0 }
0x1997   :  { %v1349_v34 = vpop.f32.mrb[10].mxu1 }
0x1998   :  { %v3202_v36 = vpop.f32.mrb[11].mxu1 }
0x199b   :  { %v1425_v37 = vpop.f32.mrb[12].mxu1 }
0x199c   :  { %v1426_v38 = vadd.f32 %v1425_v37, %v1349_v34  ;;  %v3207_v35 = vpop.f32.mrb[13].mxu1 }
0x199e   :  { %v1505_v14 = vadd.f32 %v1501_v32, %v1426_v38 }
0x19a0   :  { %v1513_v39 = vadd.f32 %v2885_v41, %v1505_v14 }
0x19a2   :  { %v1514_v42 = vmul.f32 %v1513_v39, %v3815_v18 }
0x19a4   :  { %v2886_v43 = vmul.f32 -1.442695, %v1514_v42 }
0x19a6   :  { %3595 = vpow2.f32 %v2886_v43 }
0x19b0   :  { %v3596_v44 = vpop.eup %3595 }
0x19b1   :  { %v1518_v45 = vadd.f32 1.0, %v3596_v44 }
0x19b3   :  { %3597 = vrcp.f32 %v1518_v45 }
0x19bd   :  { %v3598_v46 = vpop.eup %3597 }
0x19be   :  { %v1521_v47 = vmul.f32 2.0, %v3598_v46  ;;  %v1523_v51 = vmul.f32 0.0, %v3598_v46 }
0x19c0   :  { %v2887_v48 = vadd.f32 -1.0, %v1521_v47 }
0x19c2   :  { %1525 = vrot.lane.b32.xlu0 %v2887_v48, %s3647_s28 }
0x1a34   :  { %v1526_v49 = vpop.permute.xlu0 %1525 }
0x1a35   :  { %v1528_v50 = vmul.f32 %v3598_v46, %v1526_v49 }
0x1a37   :  { %1530 = vrot.lane.b32.xlu1 %v1528_v50, %s3648_s29 }
0x1aa9   :  { %v1531_v52 = vpop.permute.xlu1 %1530 }
0x1aaa   :  { %v1533_v53 = vadd.f32 %v1531_v52, %v1523_v51 }
0x1aac   :  { %3599 = vtanh.f32 %v1533_v53 }
0x1ab6   :  { %v3600_v40 = vpop.eup %3599 }
0x1ab7   :  { %1536 = vrot.lane.b32.xlu0 %v3600_v40, %s3647_s28 }
0x1b29   :  { %v1537_v60 = vpop.permute.xlu0 %1536 }
0x1b2a   :  { %v1539_v61 = vmul.f32 %v3598_v46, %v1537_v60 }
0x1b2c   :  { %1547 = vrot.lane.b32.xlu1 %v1539_v61, %s3648_s29 }
0x1b9e   :  { %v4049_v62 = vpop.permute.xlu1 %1547 }
0x1b9f   :  { %3222 = vmatmul.mubr.msk.f32.vlgmr.msra.gmra.mrb[14].mxu1 %vm192_vm6, %v4049_v62 }
0x1ba0   :  { %3461 = vmatpush3.bf16.msra.mxu1 %v4032_v57  ;;  %3243 = vmatprep.mubr.msk.f32.mxu1 %vm3644_vm2, %v3645_v8 }
0x1ba1   :  { %3462 = vmatprep.subr.bf16.mxu1 %v3643_v0 }
0x1ba4   :  { %3464 = vmatpush3.bf16.msra.mxu1 %v4038_v59 }
0x1ba5   :  { %3471 = vmatprep.subr.bf16.mxu1 %v3643_v0 }
0x1c72   :  { %v1617_v1 = vpop.f32.mrb[14].mxu1 }
0x1c73   :  { %v1618_v2 = vadd.f32 %v4062_v63, %v1617_v1  ;;  %v3223_v3 = vpop.f32.mrb[15].mxu1 }
0x1c75   :  { %v1621_v5 = vmul.f32 %v1618_v2, %v3815_v18 }
0x1c77   :  { %v2890_v6 = vmul.f32 -1.442695, %v1621_v5 }
0x1c79   :  { %3601 = vpow2.f32 %v2890_v6 }
0x1c83   :  { %v3602_v7 = vpop.eup %3601 }
0x1c84   :  { %v1625_v9 = vadd.f32 1.0, %v3602_v7 }
0x1c86   :  { %3603 = vrcp.f32 %v1625_v9 }
0x1c90   :  { %v3604_v11 = vpop.eup %3603 }
0x1c91   :  { %v1628_v12 = vmul.f32 2.0, %v3604_v11  ;;  %v1630_v13 = vmul.f32 %v3604_v11, %v1533_v53 }
0x1c93   :  { %v2891_v15 = vadd.f32 -1.0, %v1628_v12 }
0x1c95   :  { %1632 = vrot.lane.b32.xlu0 %v2891_v15, %s3647_s28 }
0x1d07   :  { %v1633_v4 = vpop.permute.xlu0 %1632 }
0x1d08   :  { %v1635_v16 = vmul.f32 %v3604_v11, %v1633_v4 }
0x1d0a   :  { %1637 = vrot.lane.b32.xlu1 %v1635_v16, %s3648_s29 }
0x1d7c   :  { %v1638_v17 = vpop.permute.xlu1 %1637 }
0x1d7d   :  { %v1640_v10 = vadd.f32 %v1638_v17, %v1630_v13 }
0x1d7f   :  { %3605 = vtanh.f32 %v1640_v10 }
0x1d89   :  { %v3606_v19 = vpop.eup %3605 }
0x1d8a   :  { %1643 = vrot.lane.b32.xlu0 %v3606_v19, %s3647_s28 }
0x1dfc   :  { %v1644_v20 = vpop.permute.xlu0 %1643 }
0x1dfd   :  { %v1646_v21 = vmul.f32 %v3604_v11, %v1644_v20 }
0x1dff   :  { %1648 = vrot.lane.b32.xlu1 %v1646_v21, %s3648_s29 }
0x1e71   :  { %v4070_v22 = vpop.permute.xlu1 %1648 }
0x1e72   :  { %3233 = vmatmul.mubr.msk.f32.vlgmr.msra.gmra.mrb[16].mxu0 %vm192_vm6, %v4070_v22 }
0x1e73   :  { %3467 = vmatpush3.bf16.msra.mxu0 %v4032_v57  ;;  %3254 = vmatprep.mubr.msk.f32.mxu0 %vm3644_vm2, %v3645_v8 }
0x1e74   :  { %3468 = vmatprep.subr.bf16.mxu0 %v3643_v0 }
0x1e77   :  { %3470 = vmatpush3.bf16.msra.mxu0 %v4038_v59 }
0x1e78   :  { %3477 = vmatprep.subr.bf16.mxu0 %v3643_v0 }
0x1f45   :  { %v1718_v23 = vpop.f32.mrb[16].mxu0 }
0x1f46   :  { %v1719_v24 = vadd.f32 %v4062_v63, %v1718_v23  ;;  %v3234_v25 = vpop.f32.mrb[17].mxu0 }
0x1f48   :  { %v1722_v26 = vmul.f32 %v1719_v24, %v3815_v18 }
0x1f4a   :  { %v2893_v27 = vmul.f32 -1.442695, %v1722_v26 }
0x1f4c   :  { %3607 = vpow2.f32 %v2893_v27 }
0x1f56   :  { %v3608_v28 = vpop.eup %3607 }
0x1f57   :  { %v1726_v29 = vadd.f32 1.0, %v3608_v28 }
0x1f59   :  { %3609 = vrcp.f32 %v1726_v29 }
0x1f63   :  { %v3610_v30 = vpop.eup %3609 }
0x1f64   :  { %v1729_v31 = vmul.f32 2.0, %v3610_v30  ;;  %v1731_v36 = vmul.f32 %v3610_v30, %v1640_v10 }
0x1f66   :  { %v2894_v32 = vadd.f32 -1.0, %v1729_v31 }
0x1f68   :  { %1733 = vrot.lane.b32.xlu0 %v2894_v32, %s3647_s28 }
0x1fda   :  { %v1734_v33 = vpop.permute.xlu0 %1733 }
0x1fdb   :  { %v1736_v34 = vmul.f32 %v3610_v30, %v1734_v33 }
0x1fdd   :  { %1738 = vrot.lane.b32.xlu1 %v1736_v34, %s3648_s29 }
0x204f   :  { %v1739_v37 = vpop.permute.xlu1 %1738 }
0x2050   :  { %v1741_v38 = vadd.f32 %v1739_v37, %v1731_v36 }
0x2052   :  { %3611 = vtanh.f32 %v1741_v38 }
0x205c   :  { %v3612_v35 = vpop.eup %3611 }
0x205d   :  { %1744 = vrot.lane.b32.xlu0 %v3612_v35, %s3647_s28 }
0x20cf   :  { %v1745_v41 = vpop.permute.xlu0 %1744 }
0x20d0   :  { %v1747_v14 = vmul.f32 %v3610_v30, %v1745_v41 }
0x20d2   :  { %1749 = vrot.lane.b32.xlu1 %v1747_v14, %s3648_s29  ;;  %v1270_v14 = vld [vmem:[%s4295_s19] sm:$0xff] }
0x2144   :  { %v4086_v39 = vpop.permute.xlu1 %1749 }
0x2145   :  { %3244 = vmatmul.mubr.msk.f32.vlgmr.msra.gmra.mrb[16].mxu1 %vm192_vm6, %v4086_v39 }
0x2146   :  { %3473 = vmatpush3.bf16.msra.mxu1 %v4032_v57  ;;  %3265 = vmatprep.mubr.msk.f32.mxu1 %vm3644_vm2, %v3645_v8 }
0x2147   :  { %3474 = vmatprep.subr.bf16.mxu1 %v3643_v0 }
0x214a   :  { %3476 = vmatpush3.bf16.msra.mxu1 %v4038_v59 }
0x214b   :  { %3483 = vmatprep.subr.bf16.mxu1 %v3643_v0 }
0x2218   :  { %v1819_v42 = vpop.f32.mrb[16].mxu1 }
0x2219   :  { %v1820_v43 = vadd.f32 %v4062_v63, %v1819_v42  ;;  %v3245_v44 = vpop.f32.mrb[17].mxu1  ;;  %v1271_v42 = vld [vmem:[%s4295_s19 + $0x8] sm:$0xff] }
0x221a   :  { %v1272_v44 = vld [vmem:[%s4295_s19 + $0x10] sm:$0xff] }
0x221b   :  { %v1823_v45 = vmul.f32 %v1820_v43, %v3815_v18  ;;  %v4140_v43 = vpack.c.bf16 %v1271_v42, %v1270_v14 }
0x221d   :  { %v2896_v46 = vmul.f32 -1.442695, %v1823_v45  ;;  %v1273_v45 = vld [vmem:[%s4295_s19 + $0x18] sm:$0xff] }
0x221f   :  { %3613 = vpow2.f32 %v2896_v46 }
0x2229   :  { %v3614_v47 = vpop.eup %3613 }
0x222a   :  { %v1827_v48 = vadd.f32 1.0, %v3614_v47  ;;  %v4153_v47 = vpack.c.bf16 %v1273_v45, %v1272_v44 }
0x222c   :  { %3615 = vrcp.f32 %v1827_v48 }
0x2236   :  { %v3616_v49 = vpop.eup %3615 }
0x2237   :  { %v1830_v50 = vmul.f32 2.0, %v3616_v49  ;;  %v1832_v54 = vmul.f32 %v3616_v49, %v1741_v38 }
0x2239   :  { %v2897_v51 = vadd.f32 -1.0, %v1830_v50 }
0x223b   :  { %1834 = vrot.lane.b32.xlu0 %v2897_v51, %s3647_s28  ;;  %v4187_v51 = vld [vmem:[%s4296_s20] ss:$0 sm:$0xff] }
0x22ad   :  { %v1835_v52 = vpop.permute.xlu0 %1834 }
0x22ae   :  { %v1837_v53 = vmul.f32 %v3616_v49, %v1835_v52 }
0x22b0   :  { %1839 = vrot.lane.b32.xlu1 %v1837_v53, %s3648_s29 }
0x2322   :  { %v1840_v55 = vpop.permute.xlu1 %1839 }
0x2323   :  { %v1842_v56 = vadd.f32 %v1840_v55, %v1832_v54 }
0x2325   :  { %3617 = vtanh.f32 %v1842_v56 }
0x232f   :  { %v3618_v58 = vpop.eup %3617 }
0x2330   :  { %1845 = vrot.lane.b32.xlu0 %v3618_v58, %s3647_s28 }
0x23a2   :  { %v1846_v40 = vpop.permute.xlu0 %1845 }
0x23a3   :  { %v1848_v60 = vmul.f32 %v3616_v49, %v1846_v40 }
0x23a5   :  { %1850 = vrot.lane.b32.xlu1 %v1848_v60, %s3648_s29 }
0x2417   :  { %v4102_v61 = vpop.permute.xlu1 %1850 }
0x2418   :  { %3255 = vmatmul.mubr.msk.f32.vlgmr.msra.gmra.mrb[18].mxu0 %vm192_vm6, %v4102_v61 }
0x2419   :  { %3479 = vmatpush3.bf16.msra.mxu0 %v4032_v57  ;;  %3276 = vmatprep.mubr.msk.f32.mxu0 %vm3644_vm2, %v3645_v8 }
0x241a   :  { %3480 = vmatprep.subr.bf16.mxu0 %v3643_v0 }
0x241d   :  { %3482 = vmatpush3.bf16.msra.mxu0 %v4038_v59 }
0x241e   :  { %3489 = vmatprep.subr.bf16.mxu0 %v3643_v0 }
0x24eb   :  { %v1920_v1 = vpop.f32.mrb[18].mxu0 }
0x24ec   :  { %v1921_v2 = vadd.f32 %v4062_v63, %v1920_v1  ;;  %v3256_v3 = vpop.f32.mrb[19].mxu0 }
0x24ee   :  { %v1924_v5 = vmul.f32 %v1921_v2, %v3815_v18 }
0x24f0   :  { %v2899_v6 = vmul.f32 -1.442695, %v1924_v5 }
0x24f2   :  { %3619 = vpow2.f32 %v2899_v6 }
0x24fc   :  { %v3620_v7 = vpop.eup %3619 }
0x24fd   :  { %v1928_v9 = vadd.f32 1.0, %v3620_v7 }
0x24ff   :  { %3621 = vrcp.f32 %v1928_v9 }
0x2509   :  { %v3622_v11 = vpop.eup %3621 }
0x250a   :  { %v1931_v12 = vmul.f32 2.0, %v3622_v11  ;;  %v1933_v13 = vmul.f32 %v3622_v11, %v1842_v56 }
0x250c   :  { %v2900_v15 = vadd.f32 -1.0, %v1931_v12 }
0x250e   :  { %1935 = vrot.lane.b32.xlu0 %v2900_v15, %s3647_s28 }
0x2580   :  { %v1936_v4 = vpop.permute.xlu0 %1935 }
0x2581   :  { %v1938_v16 = vmul.f32 %v3622_v11, %v1936_v4 }
0x2583   :  { %1940 = vrot.lane.b32.xlu1 %v1938_v16, %s3648_s29 }
0x25f5   :  { %v1941_v17 = vpop.permute.xlu1 %1940 }
0x25f6   :  { %v1943_v10 = vadd.f32 %v1941_v17, %v1933_v13 }
0x25f8   :  { %3623 = vtanh.f32 %v1943_v10 }
0x2602   :  { %v3624_v19 = vpop.eup %3623 }
0x2603   :  { %1946 = vrot.lane.b32.xlu0 %v3624_v19, %s3647_s28 }
0x2675   :  { %v1947_v20 = vpop.permute.xlu0 %1946 }
0x2676   :  { %v1949_v21 = vmul.f32 %v3622_v11, %v1947_v20 }
0x2678   :  { %1951 = vrot.lane.b32.xlu1 %v1949_v21, %s3648_s29 }
0x26ea   :  { %v1952_v23 = vpop.permute.xlu1 %1951 }
0x26eb   :  { %3266 = vmatmul.mubr.msk.f32.vlgmr.msra.gmra.mrb[18].mxu1 %vm192_vm6, %v1952_v23 }
0x26ec   :  { %3485 = vmatpush3.bf16.msra.mxu1 %v4032_v57  ;;  %3287 = vmatprep.mubr.msk.f32.mxu1 %vm3644_vm2, %v3645_v8 }
0x26ed   :  { %3486 = vmatprep.subr.bf16.mxu1 %v3643_v0 }
0x26f0   :  { %3488 = vmatpush3.bf16.msra.mxu1 %v4038_v59 }
0x26f1   :  { %3495 = vmatprep.subr.bf16.mxu1 %v3643_v0 }
0x27be   :  { %v2021_v24 = vpop.f32.mrb[18].mxu1 }
0x27bf   :  { %v2022_v25 = vadd.f32 %v4062_v63, %v2021_v24  ;;  %v3267_v26 = vpop.f32.mrb[19].mxu1 }
0x27c1   :  { %v2025_v27 = vmul.f32 %v2022_v25, %v3815_v18 }
0x27c3   :  { %v2902_v28 = vmul.f32 -1.442695, %v2025_v27 }
0x27c5   :  { %3625 = vpow2.f32 %v2902_v28 }
0x27cf   :  { %v3626_v29 = vpop.eup %3625 }
0x27d0   :  { %v2029_v30 = vadd.f32 1.0, %v3626_v29 }
0x27d2   :  { %3627 = vrcp.f32 %v2029_v30 }
0x27dc   :  { %v3628_v57 = vpop.eup %3627 }
0x27dd   :  { %v2032_v31 = vmul.f32 2.0, %v3628_v57  ;;  %v2034_v34 = vmul.f32 %v3628_v57, %v1943_v10 }
0x27df   :  { %v2903_v32 = vadd.f32 -1.0, %v2032_v31 }
0x27e1   :  { %2036 = vrot.lane.b32.xlu0 %v2903_v32, %s3647_s28 }
0x2853   :  { %v2037_v33 = vpop.permute.xlu0 %2036 }
0x2854   :  { %v2039_v59 = vmul.f32 %v3628_v57, %v2037_v33 }
0x2856   :  { %2041 = vrot.lane.b32.xlu1 %v2039_v59, %s3648_s29 }
0x28c8   :  { %v2042_v36 = vpop.permute.xlu1 %2041 }
0x28c9   :  { %v4129_v37 = vadd.f32 %v2042_v36, %v2034_v34 }
0x28cb   :  { %3629 = vtanh.f32 %v4129_v37 }
0x28d5   :  { %v3630_v38 = vpop.eup %3629 }
0x28d6   :  { %2047 = vrot.lane.b32.xlu0 %v3630_v38, %s3647_s28 }
0x2948   :  { %v2048_v35 = vpop.permute.xlu0 %2047 }
0x2949   :  { %v2050_v41 = vmul.f32 %v3628_v57, %v2048_v35 }
0x294b   :  { %2052 = vrot.lane.b32.xlu1 %v2050_v41, %s3648_s29 }
0x29bd   :  { %v4148_v46 = vpop.permute.xlu1 %2052 }
0x29be   :  { %3277 = vmatmul.mubr.msk.f32.vlgmr.msra.gmra.mrb[20].mxu0 %vm192_vm6, %v4148_v46 }
0x29bf   :  { %3491 = vmatpush3.bf16.msra.mxu0 %v4140_v43  ;;  %3298 = vmatprep.mubr.msk.f32.mxu0 %vm3644_vm2, %v3645_v8 }
0x29c0   :  { %3492 = vmatprep.subr.bf16.mxu0 %v3643_v0 }
0x29c3   :  { %3494 = vmatpush3.bf16.msra.mxu0 %v4153_v47 }
0x29c4   :  { %3501 = vmatprep.subr.bf16.mxu0 %v3643_v0 }
0x29c6   :  { %3299 = vmatmul.mubr.msk.f32.vlgmr.msra.gmra.mrb[22].mxu0 %vm192_vm6, %v4049_v62 }
0x29c7   :  { %3503 = vmatpush3.bf16.msra.mxu0 %v4140_v43  ;;  %3320 = vmatprep.mubr.msk.f32.mxu0 %vm3644_vm2, %v3645_v8 }
0x29c8   :  { %3504 = vmatprep.subr.bf16.mxu0 %v3643_v0 }
0x29cb   :  { %3506 = vmatpush3.bf16.msra.mxu0 %v4153_v47 }
0x29cc   :  { %3513 = vmatprep.subr.bf16.mxu0 %v3643_v0 }
0x29ce   :  { %3321 = vmatmul.mubr.msk.f32.vlgmr.msra.gmra.mrb[24].mxu0 %vm192_vm6, %v4086_v39 }
0x29cf   :  { %3515 = vmatpush3.bf16.msra.mxu0 %v4140_v43  ;;  %3342 = vmatprep.mubr.msk.f32.mxu0 %vm3644_vm2, %v3645_v8 }
0x29d0   :  { %3516 = vmatprep.subr.bf16.mxu0 %v3643_v0 }
0x29d3   :  { %3518 = vmatpush3.bf16.msra.mxu0 %v4153_v47 }
0x29d4   :  { %3525 = vmatprep.subr.bf16.mxu0 %v3643_v0 }
0x29d6   :  { %3343 = vmatmul.mubr.msk.f32.vlgmr.msra.gmra.mrb[26].mxu0 %vm192_vm6, %v1952_v23 }
0x29d7   :  { %3527 = vmatpush3.bf16.msra.mxu0 %v4140_v43  ;;  %3364 = vmatprep.mubr.msk.f32.mxu0 %vm3644_vm2, %v3645_v8 }
0x29d8   :  { %3528 = vmatprep.subr.bf16.mxu0 %v3643_v0 }
0x29db   :  { %3530 = vmatpush3.bf16.msra.mxu0 %v4153_v47 }
0x2a91   :  { %v2122_v62 = vpop.f32.mrb[20].mxu0 }
0x2a92   :  { %v2123_v39 = vadd.f32 %v4062_v63, %v2122_v62  ;;  %v3278_v48 = vpop.f32.mrb[21].mxu0 }
0x2a94   :  { %v2126_v49 = vmul.f32 %v2123_v39, %v3815_v18 }
0x2a96   :  { %v2905_v50 = vmul.f32 -1.442695, %v2126_v49 }
0x2a98   :  { %3631 = vpow2.f32 %v2905_v50 }
0x2a99   :  { %v2325_v52 = vpop.f32.mrb[22].mxu0 }
0x2a9a   :  { %v2326_v53 = vadd.f32 %v4187_v51, %v2325_v52  ;;  %v3300_v54 = vpop.f32.mrb[23].mxu0 }
0x2a9c   :  { %2330 = vst.msk [vmem:[%s4297_s21] sm:$0xf] %vm2329_vm12, %v2326_v53 }
0x2aa1   :  { %v2469_v55 = vpop.f32.mrb[24].mxu0 }
0x2aa2   :  { %v3632_v56 = vpop.eup %3631  ;;  %v2470_v58 = vadd.f32 %v4187_v51, %v2469_v55  ;;  %v3322_v40 = vpop.f32.mrb[25].mxu0 }
0x2aa3   :  { %v2130_v60 = vadd.f32 1.0, %v3632_v56 }
0x2aa4   :  { %2915 = vst.msk [vmem:[%s4297_s21 + $0x8] sm:$0xf] %vm2329_vm12, %v2470_v58 }
0x2aa5   :  { %3633 = vrcp.f32 %v2130_v60 }
0x2aa9   :  { %v2613_v1 = vpop.f32.mrb[26].mxu0 }
0x2aaa   :  { %v2614_v2 = vadd.f32 %v4187_v51, %v2613_v1  ;;  %v3344_v3 = vpop.f32.mrb[27].mxu0 }
0x2aac   :  { %2919 = vst.msk [vmem:[%s4297_s21 + $0x10] sm:$0xf] %vm2329_vm12, %v2614_v2 }
0x2aaf   :  { %v3634_v5 = vpop.eup %3633 }
0x2ab0   :  { %v2133_v6 = vmul.f32 2.0, %v3634_v5  ;;  %v2135_v12 = vmul.f32 %v3634_v5, %v4129_v37 }
0x2ab2   :  { %v2906_v7 = vadd.f32 -1.0, %v2133_v6 }
0x2ab4   :  { %2137 = vrot.lane.b32.xlu0 %v2906_v7, %s3647_s28 }
0x2b26   :  { %v2138_v9 = vpop.permute.xlu0 %2137 }
0x2b27   :  { %v2140_v11 = vmul.f32 %v3634_v5, %v2138_v9 }
0x2b29   :  { %2142 = vrot.lane.b32.xlu1 %v2140_v11, %s3648_s29 }
0x2b9b   :  { %v2143_v15 = vpop.permute.xlu1 %2142 }
0x2b9c   :  { %v4207_v4 = vadd.f32 %v2143_v15, %v2135_v12 }
0x2b9e   :  { %3635 = vtanh.f32 %v4207_v4 }
0x2ba8   :  { %v3636_v16 = vpop.eup %3635 }
0x2ba9   :  { %2148 = vrot.lane.b32.xlu0 %v3636_v16, %s3647_s28 }
0x2c1b   :  { %v2149_v13 = vpop.permute.xlu0 %2148 }
0x2c1c   :  { %v2151_v17 = vmul.f32 %v3634_v5, %v2149_v13 }
0x2c1e   :  { %2153 = vrot.lane.b32.xlu1 %v2151_v17, %s3648_s29 }
0x2c90   :  { %v2154_v10 = vpop.permute.xlu1 %2153 }
0x2c91   :  { %3288 = vmatmul.mubr.msk.f32.vlgmr.msra.gmra.mrb[20].mxu1 %vm192_vm6, %v2154_v10  ;;  %3365 = vmatmul.mubr.msk.f32.vlgmr.msra.gmra.mrb[28].mxu0 %vm192_vm6, %v2154_v10 }
0x2c92   :  { %3497 = vmatpush3.bf16.msra.mxu1 %v4140_v43  ;;  %3309 = vmatprep.mubr.msk.f32.mxu1 %vm3644_vm2, %v3645_v8 }
0x2c93   :  { %3498 = vmatprep.subr.bf16.mxu1 %v3643_v0 }
0x2c96   :  { %3500 = vmatpush3.bf16.msra.mxu1 %v4153_v47 }
0x2c97   :  { %3507 = vmatprep.subr.bf16.mxu1 %v3643_v0 }
0x2c99   :  { %3310 = vmatmul.mubr.msk.f32.vlgmr.msra.gmra.mrb[22].mxu1 %vm192_vm6, %v4070_v22 }
0x2c9a   :  { %3509 = vmatpush3.bf16.msra.mxu1 %v4140_v43  ;;  %3331 = vmatprep.mubr.msk.f32.mxu1 %vm3644_vm2, %v3645_v8 }
0x2c9b   :  { %3510 = vmatprep.subr.bf16.mxu1 %v3643_v0 }
0x2c9e   :  { %3512 = vmatpush3.bf16.msra.mxu1 %v4153_v47 }
0x2c9f   :  { %3519 = vmatprep.subr.bf16.mxu1 %v3643_v0 }
0x2ca1   :  { %3332 = vmatmul.mubr.msk.f32.vlgmr.msra.gmra.mrb[24].mxu1 %vm192_vm6, %v4102_v61 }
0x2ca2   :  { %3521 = vmatpush3.bf16.msra.mxu1 %v4140_v43  ;;  %3353 = vmatprep.mubr.msk.f32.mxu1 %vm3644_vm2, %v3645_v8 }
0x2ca3   :  { %3522 = vmatprep.subr.bf16.mxu1 %v3643_v0 }
0x2ca6   :  { %3524 = vmatpush3.bf16.msra.mxu1 %v4153_v47 }
0x2ca7   :  { %3531 = vmatprep.subr.bf16.mxu1 %v3643_v0 }
0x2ca9   :  { %3354 = vmatmul.mubr.msk.f32.vlgmr.msra.gmra.mrb[26].mxu1 %vm192_vm6, %v4148_v46 }
0x2caa   :  { %3533 = vmatpush3.bf16.msra.mxu1 %v4140_v43  ;;  %3375 = vmatprep.mubr.msk.f32.mxu1 %vm3644_vm2, %v3645_v8 }
0x2cab   :  { %3534 = vmatprep.subr.bf16.mxu1 %v3643_v0 }
0x2cae   :  { %3536 = vmatpush3.bf16.msra.mxu1 %v4153_v47 }
0x2d64   :  { %v2223_v22 = vpop.f32.mrb[20].mxu1  ;;  %v2757_v61 = vpop.f32.mrb[28].mxu0 }
0x2d65   :  { %v2224_v19 = vadd.f32 %v4062_v63, %v2223_v22  ;;  %v2758_v20 = vadd.f32 %v4187_v51, %v2757_v61  ;;  %v3289_v21 = vpop.f32.mrb[21].mxu1  ;;  %v3366_v23 = vpop.f32.mrb[29].mxu0 }
0x2d67   :  { %v2227_v24 = vmul.f32 %v2224_v19, %v3815_v18  ;;  %2923 = vst.msk [vmem:[%s4297_s21 + $0x18] sm:$0xf] %vm2329_vm12, %v2758_v20 }
0x2d69   :  { %v2908_v8 = vmul.f32 -1.442695, %v2227_v24 }
0x2d6b   :  { %3637 = vpow2.f32 %v2908_v8 }
0x2d6c   :  { %v2397_v0 = vpop.f32.mrb[22].mxu1 }
0x2d6d   :  { %v2398_v25 = vadd.f32 %v4187_v51, %v2397_v0  ;;  %v3311_v26 = vpop.f32.mrb[23].mxu1 }
0x2d6f   :  { %2913 = vst.msk [vmem:[%s4297_s21 + $0x4] sm:$0xf] %vm2329_vm12, %v2398_v25 }
0x2d74   :  { %v2541_v63 = vpop.f32.mrb[24].mxu1 }
0x2d75   :  { %v3638_v27 = vpop.eup %3637  ;;  %v2542_v18 = vadd.f32 %v4187_v51, %v2541_v63  ;;  %v3333_v28 = vpop.f32.mrb[25].mxu1 }
0x2d76   :  { %v2231_v29 = vadd.f32 1.0, %v3638_v27 }
0x2d77   :  { %2917 = vst.msk [vmem:[%s4297_s21 + $0xc] sm:$0xf] %vm2329_vm12, %v2542_v18 }
0x2d78   :  { %3639 = vrcp.f32 %v2231_v29 }
0x2d7c   :  { %v2685_v30 = vpop.f32.mrb[26].mxu1 }
0x2d7d   :  { %v2686_v57 = vadd.f32 %v4187_v51, %v2685_v30  ;;  %v3355_v31 = vpop.f32.mrb[27].mxu1 }
0x2d7f   :  { %2921 = vst.msk [vmem:[%s4297_s21 + $0x14] sm:$0xf] %vm2329_vm12, %v2686_v57 }
0x2d82   :  { %v3640_v32 = vpop.eup %3639 }
0x2d83   :  { %v2234_v33 = vmul.f32 2.0, %v3640_v32  ;;  %v2236_v37 = vmul.f32 %v3640_v32, %v4207_v4 }
0x2d85   :  { %v2909_v59 = vadd.f32 -1.0, %v2234_v33 }
0x2d87   :  { %2238 = vrot.lane.b32.xlu0 %v2909_v59, %s3647_s28 }
0x2df9   :  { %v2239_v34 = vpop.permute.xlu0 %2238 }
0x2dfa   :  { %v2241_v36 = vmul.f32 %v3640_v32, %v2239_v34 }
0x2dfc   :  { %2243 = vrot.lane.b32.xlu1 %v2241_v36, %s3648_s29 }
0x2e6e   :  { %v2244_v38 = vpop.permute.xlu1 %2243 }
0x2e6f   :  { %v2246_v35 = vadd.f32 %v2244_v38, %v2236_v37 }
0x2e71   :  { %3641 = vtanh.f32 %v2246_v35 }
0x2e7b   :  { %v3642_v41 = vpop.eup %3641 }
0x2e7c   :  { %2249 = vrot.lane.b32.xlu0 %v3642_v41, %s3647_s28 }
0x2eee   :  { %v2250_v14 = vpop.permute.xlu0 %2249 }
0x2eef   :  { %v2252_v42 = vmul.f32 %v3640_v32, %v2250_v14 }
0x2ef1   :  { %2764 = vrot.lane.b32.xlu1 %v2252_v42, %s3648_s29 }
0x2f63   :  { %v2765_v43 = vpop.permute.xlu1 %2764 }
0x2f64   :  { %3376 = vmatmul.mubr.msk.f32.vlgmr.msra.gmra.mrb[28].mxu1 %vm192_vm6, %v2765_v43 }
0x3037   :  { %v2834_v44 = vpop.f32.mrb[28].mxu1 }
0x3038   :  { %v2835_v45 = vadd.f32 %v4187_v51, %v2834_v44  ;;  %v3377_v46 = vpop.f32.mrb[29].mxu1 }
0x303a   :  { %2925 = vst.msk [vmem:[%s4297_s21 + $0x1c] sm:$0xf] %vm2329_vm12, %v2835_v45 }

</bundles_post_ra>
